<compile_context>
chip_gen: v7x
topology: tpu7x:2x2x1
jax: 0.10.0
libtpu: 0.0.40
codegen_flags: <defaults>
</compile_context>

<pallas_src>
import functools

import jax
import jax.numpy as jnp
from jax import lax
from jax.experimental import pallas as pl
from jax.experimental.pallas import tpu as pltpu

_MM_TM = 512          # rows-per-tile for the 1x1x1 (pure matmul) kernels
_MM_TN_CAP = 512      # Cout tile cap for the matmul kernels
_MM_TK_CAP = 1024     # K (reduction) tile cap for the matmul kernels
_CONV_TM = 256        # rows-per-tile for the fused 3x3x3 conv kernel
_CONV_TN_CAP = 256    # Cout tile cap for the fused 3x3x3 conv kernel
_VMEM_LIMIT = 64 * 1024 * 1024

_GELU_C = 0.7978845608028654  # sqrt(2/pi)


# ----------------------------- in-kernel math ------------------------------ #
def _gelu(x):
    # tanh-form GELU (<~1e-3 abs deviation from the exact erf form); tanh lowers
    # to the EUP so the epilogue stays off the VALU slot.
    return 0.5 * x * (1.0 + jnp.tanh(_GELU_C * (x + 0.044715 * x * x * x)))


def _round_up(x, m):
    return ((x + m - 1) // m) * m


def _pick_tile(dim, cap, quantum):
    """Largest multiple of `quantum` <= cap that divides `dim`; else full dim."""
    if dim <= cap or dim % quantum != 0:
        return dim
    t = (cap // quantum) * quantum
    while t >= quantum:
        if dim % t == 0:
            return t
        t -= quantum
    return dim


# ------------------------- fused matmul (1x1x1 conv) ------------------------ #
def _mm_bn_kernel(do_gelu, x_ref, w_ref, b_ref, o_ref, acc_ref):
    k = pl.program_id(2)

    @pl.when(k == 0)
    def _():
        acc_ref[...] = jnp.zeros_like(acc_ref)

    acc_ref[...] += jnp.dot(x_ref[...], w_ref[...],
                            preferred_element_type=jnp.float32)

    @pl.when(k == pl.num_programs(2) - 1)
    def _():
        y = acc_ref[...] + b_ref[...]
        if do_gelu:
            y = _gelu(y)
        o_ref[...] = y.astype(o_ref.dtype)


def _mm_bn_res_kernel(x_ref, w_ref, b_ref, r_ref, o_ref, acc_ref):
    k = pl.program_id(2)

    @pl.when(k == 0)
    def _():
        acc_ref[...] = jnp.zeros_like(acc_ref)

    acc_ref[...] += jnp.dot(x_ref[...], w_ref[...],
                            preferred_element_type=jnp.float32)

    @pl.when(k == pl.num_programs(2) - 1)
    def _():
        y = acc_ref[...] + b_ref[...] + r_ref[...].astype(jnp.float32)
        o_ref[...] = _gelu(y).astype(o_ref.dtype)


def mm_bn(x2, w2, shift, *, gelu, residual=None, out_dtype=jnp.bfloat16):
    """y = (x2 @ w2) + shift  [+ residual] [, GELU].  BN scale is pre-folded
    into w2.  bf16 inputs, f32 accumulation, K/Cout tiled with a VMEM acc."""
    M, K = x2.shape
    Kw, Cout = w2.shape
    assert K == Kw
    TM = min(_MM_TM, _round_up(M, 8))
    TN = _pick_tile(Cout, _MM_TN_CAP, 128)
    TK = _pick_tile(K, _MM_TK_CAP, 128)
    grid = (pl.cdiv(M, TM), Cout // TN, K // TK)
    shift2 = shift.reshape(1, Cout).astype(jnp.float32)

    in_specs = [
        pl.BlockSpec((TM, TK), lambda i, j, k: (i, k)),
        pl.BlockSpec((TK, TN), lambda i, j, k: (k, j)),
        pl.BlockSpec((1, TN), lambda i, j, k: (0, j)),
    ]
    args = [x2, w2, shift2]
    if residual is None:
        kernel = functools.partial(_mm_bn_kernel, gelu)
    else:
        kernel = _mm_bn_res_kernel
        in_specs.append(pl.BlockSpec((TM, TN), lambda i, j, k: (i, j)))
        args.append(residual)

    return pl.pallas_call(
        kernel,
        out_shape=jax.ShapeDtypeStruct((M, Cout), out_dtype),
        grid=grid,
        in_specs=in_specs,
        out_specs=pl.BlockSpec((TM, TN), lambda i, j, k: (i, j)),
        scratch_shapes=[pltpu.VMEM((TM, TN), jnp.float32)],
        compiler_params=pltpu.CompilerParams(
            dimension_semantics=("parallel", "parallel", "arbitrary"),
            vmem_limit_bytes=_VMEM_LIMIT),
    )(*args)


# --------------------- fused 3x3x3 conv (stride 1, pad 1) ------------------- #
def _conv3x3_kernel(hpad_ref, w_ref, b_ref, o_ref, xwin_ref, sem_ref, *,
                    tm, tn, epad, dsz, hsz, wsz):
    i = pl.program_id(0)
    # DMA the halo window of flattened-activation rows for this tile.
    start = pl.multiple_of(i * tm, 8)
    cp = pltpu.make_async_copy(hpad_ref.at[pl.ds(start, xwin_ref.shape[0])],
                               xwin_ref, sem_ref)
    cp.start()
    cp.wait()
    xw = xwin_ref[...].astype(jnp.float32)           # (tm + 2*epad, C)

    # Output-row coordinates of this tile, for boundary-tap masking.
    r = i * tm + lax.broadcasted_iota(jnp.int32, (tm, 1), 0)
    wo = r % wsz
    rh = r // wsz
    ho = rh % hsz
    do = (rh // hsz) % dsz
    ok = {("d", 0): do >= 1, ("d", 2): do <= dsz - 2,
          ("h", 0): ho >= 1, ("h", 2): ho <= hsz - 2,
          ("w", 0): wo >= 1, ("w", 2): wo <= wsz - 2}

    acc = jnp.zeros((tm, tn), jnp.float32)
    tap = 0
    for kd in range(3):
        for kh in range(3):
            for kw in range(3):
                off = epad + (kd - 1) * hsz * wsz + (kh - 1) * wsz + (kw - 1)
                x_t = xw[off:off + tm, :]
                conds = []
                if kd != 1:
                    conds.append(ok[("d", kd)])
                if kh != 1:
                    conds.append(ok[("h", kh)])
                if kw != 1:
                    conds.append(ok[("w", kw)])
                if conds:
                    valid = conds[0]
                    for c in conds[1:]:
                        valid = jnp.logical_and(valid, c)
                    x_t = jnp.where(valid, x_t, 0.0)
                acc = acc + jnp.dot(x_t.astype(jnp.bfloat16), w_ref[tap],
                                    preferred_element_type=jnp.float32)
                tap += 1

    y = acc + b_ref[...]
    o_ref[...] = _gelu(y).astype(o_ref.dtype)


def conv3x3_bn_gelu(h, w_taps, shift):
    """3x3x3 conv, stride 1, padding 1, + folded-BN shift + GELU.
    h: (N, D, H, W, C) bf16 channels-last; w_taps: (27, C, Cout) bf16 with the
    BN scale folded in.  Returns (N*D*H*W, Cout) bf16."""
    N, D, H, W, C = h.shape
    Cout = w_taps.shape[-1]
    M = N * D * H * W
    TM = min(_CONV_TM, _round_up(M, 8))
    TN = _pick_tile(Cout, _CONV_TN_CAP, 128)
    halo = H * W + W + 1                      # max |flat shift| over the 27 taps
    epad = _round_up(halo, 8)
    n_i = pl.cdiv(M, TM)
    rows_pad = n_i * TM + 2 * epad
    h2 = h.reshape(M, C)
    hpad = jnp.pad(h2, ((epad, rows_pad - epad - M), (0, 0)))  # small halo pad only

    kernel = functools.partial(_conv3x3_kernel, tm=TM, tn=TN, epad=epad,
                               dsz=D, hsz=H, wsz=W)
    shift2 = shift.reshape(1, Cout).astype(jnp.float32)

    return pl.pallas_call(
        kernel,
        out_shape=jax.ShapeDtypeStruct((M, Cout), jnp.bfloat16),
        grid=(n_i, Cout // TN),
        in_specs=[
            pl.BlockSpec(memory_space=pl.ANY),                   # halo-padded activation (HBM)
            pl.BlockSpec((27, C, TN), lambda i, j: (0, 0, j)),   # per-tap folded weights
            pl.BlockSpec((1, TN), lambda i, j: (0, j)),          # folded BN shift
        ],
        out_specs=pl.BlockSpec((TM, TN), lambda i, j: (i, j)),
        scratch_shapes=[pltpu.VMEM((TM + 2 * epad, C), h2.dtype),
                        pltpu.SemaphoreType.DMA(())],
        compiler_params=pltpu.CompilerParams(
            dimension_semantics=("parallel", "parallel"),
            vmem_limit_bytes=_VMEM_LIMIT),
    )(hpad, w_taps, shift2)


# ---------------------------------- glue ----------------------------------- #
def _im2col3d(x, stride):
    # x: (N, D, H, W, C)  ->  (N*Do*Ho*Wo, 27*C)  (kernel=3, padding=1)
    # Only used for the stride>1 fallback (first block of strided layers).
    N, D, H, W, C = x.shape
    Do = (D - 1) // stride + 1
    Ho = (H - 1) // stride + 1
    Wo = (W - 1) // stride + 1
    xp = jnp.pad(x, ((0, 0), (1, 1), (1, 1), (1, 1), (0, 0)))
    cols = []
    for kd in range(3):
        for kh in range(3):
            for kw in range(3):
                sl = xp[:,
                        kd:kd + (Do - 1) * stride + 1:stride,
                        kh:kh + (Ho - 1) * stride + 1:stride,
                        kw:kw + (Wo - 1) * stride + 1:stride, :]
                cols.append(sl)
    patches = jnp.stack(cols, axis=4)  # (N, Do, Ho, Wo, 27, C)
    return patches.reshape(N * Do * Ho * Wo, 27 * C), (Do, Ho, Wo)


def _conv_w(key, cout, cin, k):
    fan_in = cin * k * k * k
    return jax.random.normal(key, (cout, cin, k, k, k), jnp.float32) / jnp.sqrt(fan_in)


def _w1x1_to_mat(w):  # (Cout, Cin, 1,1,1) -> (Cin, Cout)
    cout, cin = w.shape[:2]
    return w.reshape(cout, cin).T


def _fold_bn(key, c):
    k1, k2, k3, k4 = jax.random.split(key, 4)
    gamma = 1.0 + 0.1 * jax.random.normal(k1, (c,), jnp.float32)
    beta = 0.1 * jax.random.normal(k2, (c,), jnp.float32)
    mean = 0.1 * jax.random.normal(k3, (c,), jnp.float32)
    var = 1.0 + 0.1 * jax.random.uniform(k4, (c,), jnp.float32)
    scale = gamma / jnp.sqrt(var + 1e-5)
    shift = beta - mean * scale
    return scale, shift


def init_block_params(key, in_c, out_c, downsample):
    keys = jax.random.split(key, 8)
    p = {}
    p["w1_raw"] = _conv_w(keys[0], out_c, in_c, 1)
    p["s1"], p["b1"] = _fold_bn(keys[1], out_c)
    p["w2_raw"] = _conv_w(keys[2], out_c, out_c, 3)
    p["s2"], p["b2"] = _fold_bn(keys[3], out_c)
    p["w3_raw"] = _conv_w(keys[4], out_c * 4, out_c, 1)
    p["s3"], p["b3"] = _fold_bn(keys[5], out_c * 4)

    # BN scale folded into the weight columns (exact); shift applied in-kernel.
    p["w1"] = (_w1x1_to_mat(p["w1_raw"]) * p["s1"][None, :]).astype(jnp.bfloat16)
    p["sh1"] = p["b1"].reshape(1, out_c)
    w2t = jnp.transpose(p["w2_raw"], (2, 3, 4, 1, 0)).reshape(27, out_c, out_c)
    w2t = (w2t * p["s2"][None, None, :]).astype(jnp.bfloat16)
    p["w2t"] = w2t                                  # (27, Cin, Cout): fused conv kernel
    p["w2"] = w2t.reshape(27 * out_c, out_c)        # (27*Cin, Cout): im2col fallback
    p["sh2"] = p["b2"].reshape(1, out_c)
    p["w3"] = (_w1x1_to_mat(p["w3_raw"]) * p["s3"][None, :]).astype(jnp.bfloat16)
    p["sh3"] = p["b3"].reshape(1, out_c * 4)
    if downsample:
        p["wd_raw"] = _conv_w(keys[6], out_c * 4, in_c, 1)
        p["sd"], p["bd"] = _fold_bn(keys[7], out_c * 4)
        p["wd"] = (_w1x1_to_mat(p["wd_raw"]) * p["sd"][None, :]).astype(jnp.bfloat16)
        p["shd"] = p["bd"].reshape(1, out_c * 4)
    return p


# --------------------------- ResBlock101 / ResLayer ------------------------- #
def res_block_forward(x, p, stride, downsample):
    # x: (N, D, H, W, Cin) channels-last, bf16
    N, D, H, W, Cin = x.shape
    M = N * D * H * W
    x2 = x.reshape(M, Cin)
    out_c = p["w1"].shape[1]

    # conv1 (1x1x1) + BN + GELU
    h = mm_bn(x2, p["w1"], p["sh1"], gelu=True)

    # conv2 (3x3x3, pad=1) + BN + GELU
    if stride == 1:
        h2 = conv3x3_bn_gelu(h.reshape(N, D, H, W, out_c), p["w2t"], p["sh2"])
        Do, Ho, Wo = D, H, W
    else:
        # TODO(synk): the strided 3x3x3 conv still uses wrapper-level im2col
        # (only hit on the first block of strided layers, where M is 8x smaller).
        patches, (Do, Ho, Wo) = _im2col3d(h.reshape(N, D, H, W, out_c), stride)
        h2 = mm_bn(patches, p["w2"], p["sh2"], gelu=True)

    # residual branch
    if downsample:
        xs = x[:, ::stride, ::stride, ::stride, :].reshape(-1, Cin)
        res2 = mm_bn(xs, p["wd"], p["shd"], gelu=False)
    else:
        assert Cin == 4 * out_c and stride == 1, "identity residual needs Cin==4*out_c, stride==1"
        res2 = x2

    # conv3 (1x1x1) + BN + residual add + GELU (fused in one kernel)
    out2 = mm_bn(h2, p["w3"], p["sh3"], gelu=False, residual=res2)
    return out2.reshape(N, Do, Ho, Wo, out_c * 4)


def res_layer_forward(x_ncdhw, params_list, stride):
    x = jnp.transpose(x_ncdhw, (0, 2, 3, 4, 1)).astype(jnp.bfloat16)  # NCDHW -> NDHWC, bf16
    for i, p in enumerate(params_list):
        x = res_block_forward(x, p, stride if i == 0 else 1, downsample=(i == 0))
    return jnp.transpose(x, (0, 4, 1, 2, 3)).astype(jnp.float32)      # NDHWC -> NCDHW


# ------------------------------- pure-JAX ref ------------------------------- #
def _conv3d_ref(x, w, stride, pad):
    return lax.conv_general_dilated(
        x, w, window_strides=(stride,) * 3, padding=[(pad, pad)] * 3,
        dimension_numbers=("NCDHW", "OIDHW", "NCDHW"),
        precision=lax.Precision.HIGHEST)


def res_layer_ref(x, params_list, stride):
    def bn(y, scale, shift):
        return y * scale[None, :, None, None, None] + shift[None, :, None, None, None]

    for i, p in enumerate(params_list):
        s = stride if i == 0 else 1
        h = jax.nn.gelu(bn(_conv3d_ref(x, p["w1_raw"], 1, 0), p["s1"], p["b1"]), approximate=False)
        h = jax.nn.gelu(bn(_conv3d_ref(h, p["w2_raw"], s, 1), p["s2"], p["b2"]), approximate=False)
        h = bn(_conv3d_ref(h, p["w3_raw"], 1, 0), p["s3"], p["b3"])
        if i == 0:
            res = bn(_conv3d_ref(x, p["wd_raw"], s, 0), p["sd"], p["bd"])
        else:
            res = x
        x = jax.nn.gelu(h + res, approximate=False)
    return x


# ----------------------------------- main ----------------------------------- #
if __name__ == "__main__":
    key = jax.random.PRNGKey(0)
    kx, kp = jax.random.split(key)

    N, in_c, out_c, n_blocks = 2, 4, 4, 2
    D = H = W = 8
    x = jax.random.normal(kx, (N, in_c, D, H, W), jnp.float32)

    for stride in (1, 2):  # stride=1: fused 3x3x3 path; stride=2: strided layer path
        bkeys = jax.random.split(jax.random.fold_in(kp, stride), n_blocks)
        params_list = []
        for i in range(n_blocks):
            ic = in_c if i == 0 else out_c * 4
            params_list.append(init_block_params(bkeys[i], ic, out_c, downsample=(i == 0)))

        out = jax.block_until_ready(res_layer_forward(x, params_list, stride))
        ref = res_layer_ref(x, params_list, stride)

        sp = (D - 1) // stride + 1
        assert out.shape == ref.shape == (N, out_c * 4, sp, sp, sp), (out.shape, ref.shape)
        err = float(jnp.max(jnp.abs(out - ref)))
        scale_ref = float(jnp.max(jnp.abs(ref)))
        # bf16 compute + tanh-GELU tolerance (relative to the output scale)
        assert err <= 6e-2 * scale_ref + 2e-2, (stride, err, scale_ref)

    print("KERNEL_OK")
</pallas_src>

<mosaic_0001>
module attributes {stable_mosaic.version = 11 : i64} {
  func.func @_mm_bn_kernel(%arg0: i32, %arg1: i32, %arg2: i32, %arg3: memref<512x4xbf16, #tpu.memory_space<vmem>>, %arg4: memref<4x4xbf16, #tpu.memory_space<vmem>>, %arg5: memref<1x4xf32, #tpu.memory_space<vmem>>, %arg6: memref<512x4xbf16, #tpu.memory_space<vmem>>, %arg7: memref<512x4xf32, #tpu.memory_space<vmem>>) attributes {dimension_semantics = [#tpu.dimension_semantics<parallel>, #tpu.dimension_semantics<parallel>, #tpu.dimension_semantics<arbitrary>], iteration_bounds = array<i64: 2, 1, 1>, scalar_prefetch = 0 : i64, scratch_operands = 1 : i64, tpu.core_type = #tpu.core_type<tc>, window_params = [{transform_indices = @transform_0, window_bounds = array<i64: 512, 4>}, {transform_indices = @transform_1, window_bounds = array<i64: 4, 4>}, {transform_indices = @transform_2, window_bounds = array<i64: 1, 4>}, {transform_indices = @transform_3, window_bounds = array<i64: 512, 4>}]} {
    %c0_i32 = arith.constant 0 : i32
    %0 = arith.cmpi eq, %arg2, %c0_i32 : i32
    %1 = arith.extui %0 : i1 to i32
    %c0_i32_0 = arith.constant 0 : i32
    %2 = arith.cmpi ne, %1, %c0_i32_0 : i32
    scf.if %2 {
      %cst_10 = arith.constant 0.000000e+00 : f32
      %12 = vector.broadcast %cst_10 : f32 to vector<512x4xf32>
      %c0_11 = arith.constant 0 : index
      %c0_12 = arith.constant 0 : index
      %13 = vector.load %arg7[%c0_11, %c0_12] : memref<512x4xf32, #tpu.memory_space<vmem>>, vector<512x4xf32>
      tpu.vector_store %arg7[%c0_11, %c0_12], %12 {strides = array<i32>} : memref<512x4xf32, #tpu.memory_space<vmem>>, vector<512x4xf32>,
    } else {
    }
    %c0 = arith.constant 0 : index
    %c0_1 = arith.constant 0 : index
    %3 = vector.load %arg7[%c0, %c0_1] : memref<512x4xf32, #tpu.memory_space<vmem>>, vector<512x4xf32>
    %c0_2 = arith.constant 0 : index
    %c0_3 = arith.constant 0 : index
    %4 = vector.load %arg3[%c0_2, %c0_3] : memref<512x4xbf16, #tpu.memory_space<vmem>>, vector<512x4xbf16>
    %c0_4 = arith.constant 0 : index
    %c0_5 = arith.constant 0 : index
    %5 = vector.load %arg4[%c0_4, %c0_5] : memref<4x4xbf16, #tpu.memory_space<vmem>>, vector<4x4xbf16>
    %cst = arith.constant dense<0.000000e+00> : vector<512x4xf32>
    %6 = tpu.matmul %4, %5, %cst {dimension_numbers = #tpu.dot_dimension_numbers<[1], [0], [0], [1], [0, 0, 1, 1], [], []>} : vector<512x4xbf16>, vector<4x4xbf16>, vector<512x4xf32> -> vector<512x4xf32>
    %7 = arith.addf %3, %6 : vector<512x4xf32>
    %c0_6 = arith.constant 0 : index
    %c0_7 = arith.constant 0 : index
    %8 = vector.load %arg7[%c0_6, %c0_7] : memref<512x4xf32, #tpu.memory_space<vmem>>, vector<512x4xf32>
    tpu.vector_store %arg7[%c0_6, %c0_7], %7 {strides = array<i32>} : memref<512x4xf32, #tpu.memory_space<vmem>>, vector<512x4xf32>,
    %c0_i32_8 = arith.constant 0 : i32
    %9 = arith.cmpi eq, %arg2, %c0_i32_8 : i32
    %10 = arith.extui %9 : i1 to i32
    %c0_i32_9 = arith.constant 0 : i32
    %11 = arith.cmpi ne, %10, %c0_i32_9 : i32
    scf.if %11 {
      %c0_10 = arith.constant 0 : index
      %c0_11 = arith.constant 0 : index
      %12 = vector.load %arg7[%c0_10, %c0_11] : memref<512x4xf32, #tpu.memory_space<vmem>>, vector<512x4xf32>
      %c0_12 = arith.constant 0 : index
      %c0_13 = arith.constant 0 : index
      %13 = vector.load %arg5[%c0_12, %c0_13] : memref<1x4xf32, #tpu.memory_space<vmem>>, vector<1x4xf32>
      %14 = vector.broadcast %13 : vector<1x4xf32> to vector<512x4xf32>
      %15 = arith.addf %12, %14 : vector<512x4xf32>
      %cst_14 = arith.constant 5.000000e-01 : f32
      %16 = vector.broadcast %cst_14 : f32 to vector<512x4xf32>
      %17 = arith.mulf %16, %15 : vector<512x4xf32>
      %cst_15 = arith.constant 4.471500e-02 : f32
      %18 = vector.broadcast %cst_15 : f32 to vector<512x4xf32>
      %19 = arith.mulf %18, %15 : vector<512x4xf32>
      %20 = arith.mulf %19, %15 : vector<512x4xf32>
      %21 = arith.mulf %20, %15 : vector<512x4xf32>
      %22 = arith.addf %15, %21 : vector<512x4xf32>
      %cst_16 = arith.constant 0.797884583 : f32
      %23 = vector.broadcast %cst_16 : f32 to vector<512x4xf32>
      %24 = arith.mulf %23, %22 : vector<512x4xf32>
      %25 = math.tanh %24 : vector<512x4xf32>
      %cst_17 = arith.constant 1.000000e+00 : f32
      %26 = vector.broadcast %cst_17 : f32 to vector<512x4xf32>
      %27 = arith.addf %26, %25 : vector<512x4xf32>
      %28 = arith.mulf %17, %27 : vector<512x4xf32>
      %29 = arith.truncf %28 : vector<512x4xf32> to vector<512x4xbf16>
      %c0_18 = arith.constant 0 : index
      %c0_19 = arith.constant 0 : index
      %30 = vector.load %arg6[%c0_18, %c0_19] : memref<512x4xbf16, #tpu.memory_space<vmem>>, vector<512x4xbf16>
      tpu.vector_store %arg6[%c0_18, %c0_19], %29 {strides = array<i32>} : memref<512x4xbf16, #tpu.memory_space<vmem>>, vector<512x4xbf16>,
    } else {
    }
    return
  }
  func.func @transform_0(%arg0: i32, %arg1: i32, %arg2: i32) -> (i32, i32) {
    %c0_i32 = arith.constant 0 : i32
    return %arg0, %arg2 : i32, i32
  }
  func.func @transform_1(%arg0: i32, %arg1: i32, %arg2: i32) -> (i32, i32) {
    %c0_i32 = arith.constant 0 : i32
    return %arg2, %arg1 : i32, i32
  }
  func.func @transform_2(%arg0: i32, %arg1: i32, %arg2: i32) -> (i32, i32) {
    %c0_i32 = arith.constant 0 : i32
    %c0_i32_0 = arith.constant 0 : i32
    return %c0_i32, %arg1 : i32, i32
  }
  func.func @transform_3(%arg0: i32, %arg1: i32, %arg2: i32) -> (i32, i32) {
    %c0_i32 = arith.constant 0 : i32
    return %arg0, %arg1 : i32, i32
  }
}

</mosaic_0001>

<bundles_post_ra>
// kernel: tpu_custom_call.1
= control target key start
LH: loop header
LB: loop body
LE: loop exit
PB: predicated region body
PF: predicated region fallthrough
CT: control target
= control target key end

     0   :  { %8 = vsyncpa [#allocation4], 0  ;;  %s4317_s0 = inlined_call_operand.hbm [shape: bf16[1024,4], index: 0, kind: input, shape index: {}]   ;;  %s4318_s1 = inlined_call_operand.hbm [shape: bf16[4,4], index: 1, kind: input, shape index: {}]   ;;  %s4319_s2 = inlined_call_operand.hbm [shape: f32[1,4], index: 2, kind: input, shape index: {}]   ;;  %s4320_s3 = inlined_call_operand.hbm [shape: bf16[1024,4], index: 3, kind: output, shape index: {}]  }
   0x1   :  { %10 = vsyncpa [#allocation4 + $0x1], 0 }
   0x2   :  { %11 = vsyncpa [#allocation7], 0 }
   0x3   :  { %12 = vsyncpa [#allocation5], 0 }
   0x4   :  { %14 = vsyncpa [#allocation5 + $0x1], 0  ;;  %s3066_s12 = smov 0   ;;  %s3068_s13 = smov 0  }
   0x5   :  { %s3070_s14 = smov 0   ;;  %s3072_s15 = smov 0  }
   0x6   :  { %s3074_s16 = smov 0   ;;  %s3076_s17 = smov 0  }
   0x7 LB: > { %s2296_s18 = sadd.s32 4294967295, %s3035_s17   ;;  %s2297_s19 = sadd.s32 4294967294, %s3035_s17   ;;  %s3035_s17 = sphi %s3076_s17, %s20_s17   ;;  %s3031_s16 = sphi %s3074_s16, %s4346_s16   ;;  %s3027_s15 = sphi %s3072_s15, %s4345_s15   ;;  %s3023_s14 = sphi %s3070_s14, %s4344_s14   ;;  %s3019_s13 = sphi %s3068_s13, %s4343_s13   ;;  %s3015_s12 = sphi %s3066_s12, %s4342_s12  }
   0x8   : > { %s48_s20 = sadd.s32 1, %s3023_s14  ;;  %p55_p0 = scmp.ne.s32.totalorder %s3023_s14, %s3019_s13 }
   0x9   : > { %p56_p1 = scmp.eq.s32.totalorder %s3035_s17, 0  ;;  %p61_p2 = scmp.ne.s32.totalorder %s3019_s13, %s3015_s12 }
   0xa   : > { %p3104_p3 = scmp.eq.s32.totalorder %s2296_s18, 0  ;;  %p141_p4 = scmp.eq.s32.totalorder %s2296_s18, 1 }
   0xb   : > { %p3108_p5 = por %p56_p1, %p55_p0  ;;  %p147_p6 = scmp.eq.s32.totalorder %s2297_s19, 1 }
   0xc   : > { %s4327_s21 = scalar_select %p3104_p3, 1, 0 }
   0xd   : > { %p3114_p7 = por %p3104_p3, %p61_p2  ;;  %p3118_p8 = por %p141_p4, %p55_p0 }
   0xe   : > { %p3122_p9 = por %p147_p6, %p61_p2  ;;  %p2298_p10 = scmp.ge.s32.totalorder %s3035_s17, 1 }
   0xf   : > { %s4329_s23 = scalar_select %p3114_p7, 1, 0 }
  0x10   : > { %s4330_s24 = scalar_select %p3118_p8, 1, 0 }
  0x11   : > { %s4331_s25 = scalar_select %p3122_p9, 1, 0 }
  0x12   : > { %p154_p11 = scmp.lt.s32.totalorder %s3035_s17, 3  ;;  %s3037_s27 = smov [#allocation6]  }
  0x13   : > { %s170_s28 = sshll.u32 %s3037_s27, 4  ;;  %p2642_p1 = scmp.lt.s32.totalorder %s3035_s17, 2  ;;  %s171_s28 = int_to_ptr.vmem [resolvable:$true] %s170_s28 }
  0x14   : > { %p3129_p13 = pnand %p2298_p10, %p154_p11  ;;  %s3038_s30 = smov [#allocation8]  }
  0x15   : > { %p3138_p4 = pnand %p2642_p1, %p3108_p5  ;;  %s183_s4 = sshll.u32 %s3038_s30, 4  ;;  %s3148_s4 = int_to_ptr.vmem [resolvable:$true] %s183_s4 }
  0x16   : > { %s4332_s26 = scalar_select %p3129_p13, 1, 0 }
  0x17   : > { %p2625_p0 = pneg %p3129_p13  ;;  %s2863_s8 = scalar_lea.hbm %s4318_s1, 32 }
  0x18   : > { %s4333_s29 = scalar_select %p3138_p4, 1, 0 }
  0x19   : > { %p3144_p2 = pnand %p2625_p0, %p3104_p3  ;;  %p2864_p5 = scmp.ne.s32.totalorder %s4318_s1, %s2863_s8 }
  0x1a   : > { %p2870_p1 = scmp.lt.u32.totalorder %s2863_s8, %s4318_s1 }
  0x1b   : > { %p2865_p6 = pneg %p3144_p2 }
  0x1d   : > { %p2866_p10 = pnand %p2865_p6, %p2864_p5 }
  0x1f   : > { %p2867_p11 = pneg %p2866_p10 }
  0x21   : > { %p2872_p0 = pnand %p2870_p1, %p2867_p11 }
  0x23   : > { %2875 = shalt.err (!%p2872_p0)
}
  0x24   : > { %s2876_s19 = scalar_lea.vmem %s171_s28, 32  ;;  %p2884_p3 = scmp.lt.s32.totalorder %s171_s28, %s171_s28 }
  0x25   : > { %p2877_p12 = scmp.ne.s32.totalorder %s171_s28, %s2876_s19  ;;  %p2885_p7 = scmp.lt.s32.totalorder %s2876_s19, %s2876_s19 }
  0x27   : > { %p2879_p9 = pnand %p2877_p12, %p2865_p6  ;;  %p2886_p13 = por %p2885_p7, %p2884_p3 }
  0x29   : > { %p2880_p8 = pneg %p2879_p9 }
  0x2b   : > { %p2887_p4 = pnand %p2886_p13, %p2880_p8 }
  0x2d   : > { %2890 = shalt.err (!%p2887_p4)
}
  0x2e   : > { %2628 = dma.hbm_to_vmem [thread:$0]  (!%p3144_p2), %s4318_s1, 32, %s171_s28, [#allocation7]  }
  0x2f   : > { %s2891_s7 = scalar_lea.hbm %s4319_s2, 16 }
  0x30   : > { %p2892_p9 = scmp.ne.s32.totalorder %s4319_s2, %s2891_s7  ;;  %p2898_p8 = scmp.lt.u32.totalorder %s2891_s7, %s4319_s2 }
  0x32   : > { %p2894_p3 = pnand %p2892_p9, %p2865_p6 }
  0x34   : > { %p2895_p7 = pneg %p2894_p3 }
  0x36   : > { %p2900_p12 = pnand %p2898_p8, %p2895_p7 }
  0x38   : > { %2903 = shalt.err (!%p2900_p12)
}
  0x39   : > { %s2904_s28 = scalar_lea.vmem %s3148_s4, 16  ;;  %s2911_s18 = scalar_lea.vmem %s3148_s4, 32 }
  0x3a   : > { %p2905_p13 = scmp.ne.s32.totalorder %s3148_s4, %s2904_s28  ;;  %p2912_p10 = scmp.lt.s32.totalorder %s3148_s4, %s3148_s4 }
  0x3b   : > { %p2913_p11 = scmp.lt.s32.totalorder %s2911_s18, %s2904_s28 }
  0x3c   : > { %p2907_p4 = pnand %p2905_p13, %p2865_p6 }
  0x3d   : > { %p2914_p1 = por %p2913_p11, %p2912_p10 }
  0x3e   : > { %p2908_p5 = pneg %p2907_p4 }
  0x40   : > { %p2915_p0 = pnand %p2914_p1, %p2908_p5 }
  0x42   : > { %2918 = shalt.err (!%p2915_p0)
}
  0x43   : > { %2631 = dma.hbm_to_vmem [thread:$0]  (!%p3144_p2), %s4319_s2, 16, %s3148_s4, [#allocation7]  }
  0x44   : > { %s39_s27 = sadd.s32 1, %s3031_s16  ;;  %s194_s30 = sand.u32 1, %s3023_s14  }
  0x45   : > { %p41_p6 = scmp.ge.s32.totalorder %s39_s27, 2  ;;  %s2302_s6 = sshll.u32 %s194_s30, 8 }
  0x46   : > { %s2444_s7 = sshll.u32 %s3031_s16, 12  ;;  %s198_s4 = scalar_lea.vmem [#allocation3], %s2302_s6 }
  0x47   : > { %s4348_s27 = smov (%p41_p6, %s39_s27), 0  ;;  %s3206_s9 = scalar_lea.hbm %s4317_s0, %s2444_s7 }
  0x48   : > { %s43_s10 = ssub.s32 %s3031_s16, %s4348_s27  ;;  %s206_s11 = sshll.u32 %s198_s4, 4  ;;  %s3210_s11 = int_to_ptr.vmem [resolvable:$true] %s206_s11 }
  0x49   : > { %p46_p2 = scmp.eq.s32.totalorder %s43_s10, 0  ;;  %s3217_s18 = scalar_lea.sflag [#allocation4], %s194_s30 }
  0x4a   : > { %s2919_s19 = scalar_lea.hbm %s3206_s9, 4096  ;;  %p4335_p3 = scmp.ne.s32.totalorder %s4333_s29, 0 }
  0x4b   : > { %s3215_s28 = scalar_select %p46_p2, %s3023_s14, %s48_s20  }
  0x4c   : > { %p2920_p9 = scmp.ne.s32.totalorder %s3206_s9, %s2919_s19  ;;  %p2921_p7 = pneg %p4335_p3 }
  0x4d   : > { %s2924_s6 = scalar_lea.hbm %s4317_s0, 8192  ;;  %p2925_p13 = scmp.lt.u32.totalorder %s3206_s9, %s4317_s0 }
  0x4e   : > { %p2922_p8 = pnand %p2921_p7, %p2920_p9  ;;  %p2926_p4 = scmp.lt.u32.totalorder %s2924_s6, %s2919_s19 }
  0x4f   : > { %p2928_p10 = scmp.lt.u32.totalorder %s2919_s19, %s3206_s9 }
  0x50   : > { %p2923_p12 = pneg %p2922_p8  ;;  %p2927_p5 = por %p2926_p4, %p2925_p13 }
  0x52   : > { %p2929_p11 = por %p2928_p10, %p2927_p5 }
  0x54   : > { %p2930_p1 = pnand %p2929_p11, %p2923_p12 }
  0x56   : > { %2933 = shalt.err (!%p2930_p1)
}
  0x57   : > { %s2934_s20 = scalar_lea.vmem %s3210_s11, 4096  ;;  %s3039_s30 = smov [#allocation3]  }
  0x58   : > { %p2935_p0 = scmp.ne.s32.totalorder %s3210_s11, %s2934_s20  ;;  %s2939_s10 = sshll.u32 %s3039_s30, 4  ;;  %s2940_s10 = int_to_ptr.vmem [resolvable:$false] %s2939_s10 }
  0x59   : > { %s2941_s4 = scalar_lea.vmem %s2940_s10, 8192  ;;  %p2942_p9 = scmp.lt.s32.totalorder %s3210_s11, %s2940_s10 }
  0x5a   : > { %p2937_p6 = pnand %p2935_p0, %p2921_p7  ;;  %p2943_p8 = scmp.lt.s32.totalorder %s2941_s4, %s2934_s20 }
  0x5c   : > { %p2938_p2 = pneg %p2937_p6  ;;  %p2944_p13 = por %p2943_p8, %p2942_p9 }
  0x5e   : > { %p2945_p4 = pnand %p2944_p13, %p2938_p2 }
  0x60   : > { %2948 = shalt.err (!%p2945_p4)
}
  0x61   : > { %s3040_s19 = smov 64   ;;  %s3041_s22 = smov 4  }
  0x62   : > { %2635 = dma.hbm_to_vmem [thread:$0]  (!%p4335_p3), %s3206_s9, 4096, %s3210_s11, %s3217_s18, %s3040_s19, %s3040_s19, %s3041_s22  }
  0x63   : > { %p4336_p7 = scmp.ne.s32.totalorder %s4332_s26, 0 }
  0x64   : > { %s3248_s7 = sand.u32 (!%p4336_p7), 1, %s3019_s13   ;;  %p4337_p12 = scmp.ne.s32.totalorder (!%p4336_p7), %s4329_s23, 0 }
  0x65   : > { %218 = sbr.rel (%p4336_p7) target bundleno = 562 (0x232), region = 32  ;;  %s2306_s6 = sshll.u32 (!%p4336_p7), %s3248_s7, 8 }
  0x66   : > { %s221_s5 = scalar_lea.sflag (!%p4336_p7), [#allocation4], %s3248_s7  ;;  %s3254_s8 = scalar_lea.vmem (!%p4336_p7), [#allocation3], %s2306_s6 }
  0x6c   : > { %3002 = dma.done.wait (%p4337_p12), %s221_s5, 4096  }
  0x6d   : > { %3004 = vsyncadd (%p4337_p12), %s221_s5, 4294963200  ;;  %p4338_p3 = scmp.ne.s32.totalorder %s4327_s21, 0 }
  0x6f   : > { %3006 = dma.done.wait (%p4338_p3), [#allocation7], 48  }
  0x70   : > { %3008 = vsyncadd (%p4338_p3), [#allocation7], 4294967248  ;;  %vm262_vm0 = vcmask 31744   ;;  %v3042_v0 = vmov 0.0   ;;  %vm713_vm1 = vcmask 1041408   ;;  %v2701_v3 = vld [vmem:[%s3254_s8] sm:$0xff]  }
  0x71   : > { %265 = vst.msk [vmem:[#allocation2 + $0x10] sm:$0xff] %vm262_vm0, %v3042_v0  ;;  %263 = vst.msk [vmem:[#allocation2] sm:$0xff] %vm262_vm0, %v3042_v0  ;;  %v455_v1 = vld [vmem:[#allocation6] sm:$0x3]  ;;  %2545 = vmatprep.mubr.msk.bf16.mxu0 %vm262_vm0, %v2701_v3  ;;  %v2703_v5 = vld [vmem:[%s3254_s8 + $0x8] sm:$0xff]   ;;  %vm2104_vm2 = vcmask 27648  }
  0x72   : > { %264 = vst.msk [vmem:[#allocation2 + $0x8] sm:$0xff] %vm262_vm0, %v3042_v0  ;;  %266 = vst.msk [vmem:[#allocation2 + $0x18] sm:$0xff] %vm262_vm0, %v3042_v0  ;;  %2611 = vmatprep.subr.msk.bf16.mxu0 %vm713_vm1, %v455_v1  ;;  %2612 = vmatprep.subr.msk.bf16.mxu1 %vm713_vm1, %v455_v1  ;;  %v715_v2 = vsel %vm713_vm1, %v455_v1, 0  ;;  %v2702_v4 = vld [vmem:[%s3254_s8 + $0x80] sm:$0xff]   ;;  %v2704_v6 = vld [vmem:[%s3254_s8 + $0x88] sm:$0xff]   ;;  %s3580_s21 = scalar_lea.vmem [#allocation9], %s2306_s6 }
  0x73   : > { %267 = vst.msk [vmem:[#allocation2 + $0x20] sm:$0xff] %vm262_vm0, %v3042_v0  ;;  %268 = vst.msk [vmem:[#allocation2 + $0x28] sm:$0xff] %vm262_vm0, %v3042_v0  ;;  %2544 = vmatpush3.bf16.msra.mxu0 %v715_v2  ;;  %2610 = vmatpush3.bf16.msra.mxu1 %v715_v2  ;;  %v2705_v7 = vld [vmem:[%s3254_s8 + $0x10] sm:$0xff]   ;;  %v2707_v9 = vld [vmem:[%s3254_s8 + $0x18] sm:$0xff]   ;;  %s2509_s23 = sshll.u32 %s3027_s15, 12  ;;  %s2184_s26 = sshll.u32 %s3580_s21, 4  ;;  %s4266_s26 = int_to_ptr.vmem [resolvable:$true] %s2184_s26 }
  0x74   : > { %269 = vst.msk [vmem:[#allocation2 + $0x30] sm:$0xff] %vm262_vm0, %v3042_v0  ;;  %270 = vst.msk [vmem:[#allocation2 + $0x38] sm:$0xff] %vm262_vm0, %v3042_v0  ;;  %2577 = vmatprep.mubr.msk.bf16.mxu1 %vm262_vm0, %v2702_v4  ;;  %v2706_v8 = vld [vmem:[%s3254_s8 + $0x90] sm:$0xff]   ;;  %v2708_v10 = vld [vmem:[%s3254_s8 + $0x98] sm:$0xff]   ;;  %s4264_s11 = scalar_lea.hbm %s4320_s3, %s2509_s23  ;;  %s2170_s18 = scalar_lea.sflag [#allocation5], %s3248_s7 }
  0x75   : > { %271 = vst.msk [vmem:[#allocation2 + $0x40] sm:$0xff] %vm262_vm0, %v3042_v0  ;;  %272 = vst.msk [vmem:[#allocation2 + $0x48] sm:$0xff] %vm262_vm0, %v3042_v0  ;;  %v2709_v11 = vld [vmem:[%s3254_s8 + $0x20] sm:$0xff]   ;;  %v2711_v13 = vld [vmem:[%s3254_s8 + $0x28] sm:$0xff]   ;;  %s2949_s15 = scalar_lea.vmem %s4266_s26, 4096  ;;  %p4339_p10 = scmp.ne.s32.totalorder %s4330_s24, 0 }
  0x76   : > { %273 = vst.msk [vmem:[#allocation2 + $0x50] sm:$0xff] %vm262_vm0, %v3042_v0  ;;  %274 = vst.msk [vmem:[#allocation2 + $0x58] sm:$0xff] %vm262_vm0, %v3042_v0  ;;  %2546 = vmatmul.mubr.msk.bf16.vlgmr.msra.gmra.mrb[0].mxu0 %vm262_vm0, %v2703_v5  ;;  %2578 = vmatmul.mubr.msk.bf16.vlgmr.msra.gmra.mrb[0].mxu1 %vm262_vm0, %v2704_v6  ;;  %v2710_v12 = vld [vmem:[%s3254_s8 + $0xa0] sm:$0xff]   ;;  %v2712_v14 = vld [vmem:[%s3254_s8 + $0xa8] sm:$0xff]   ;;  %p2950_p5 = scmp.ne.s32.totalorder %s4266_s26, %s2949_s15  ;;  %s3043_s20 = smov [#allocation9]  }
  0x77   : > { %275 = vst.msk [vmem:[#allocation2 + $0x60] sm:$0xff] %vm262_vm0, %v3042_v0  ;;  %276 = vst.msk [vmem:[#allocation2 + $0x68] sm:$0xff] %vm262_vm0, %v3042_v0  ;;  %2549 = vmatprep.mubr.msk.bf16.mxu0 %vm262_vm0, %v2705_v7  ;;  %2581 = vmatprep.mubr.msk.bf16.mxu1 %vm262_vm0, %v2706_v8  ;;  %v2713_v15 = vld [vmem:[%s3254_s8 + $0x30] sm:$0xff]   ;;  %v2715_v17 = vld [vmem:[%s3254_s8 + $0x38] sm:$0xff]   ;;  %s2953_s30 = sshll.u32 %s3043_s20, 4  ;;  %s2954_s30 = int_to_ptr.vmem [resolvable:$false] %s2953_s30 }
  0x78   : > { %277 = vst.msk [vmem:[#allocation2 + $0x70] sm:$0xff] %vm262_vm0, %v3042_v0  ;;  %278 = vst.msk [vmem:[#allocation2 + $0x78] sm:$0xff] %vm262_vm0, %v3042_v0  ;;  %v2714_v16 = vld [vmem:[%s3254_s8 + $0xb0] sm:$0xff]   ;;  %v2716_v18 = vld [vmem:[%s3254_s8 + $0xb8] sm:$0xff]   ;;  %p2951_p11 = pnand %p2950_p5, %p4339_p10  ;;  %s2955_s10 = scalar_lea.vmem %s2954_s30, 8192 }
  0x79   : > { %279 = vst.msk [vmem:[#allocation2 + $0x80] sm:$0xff] %vm262_vm0, %v3042_v0  ;;  %280 = vst.msk [vmem:[#allocation2 + $0x88] sm:$0xff] %vm262_vm0, %v3042_v0  ;;  %v2717_v19 = vld [vmem:[%s3254_s8 + $0x40] sm:$0xff]   ;;  %v2719_v21 = vld [vmem:[%s3254_s8 + $0x48] sm:$0xff]   ;;  %p2956_p0 = scmp.lt.s32.totalorder %s4266_s26, %s2954_s30  ;;  %p2957_p6 = scmp.lt.s32.totalorder %s2955_s10, %s2949_s15 }
  0x7a   : > { %281 = vst.msk [vmem:[#allocation2 + $0x90] sm:$0xff] %vm262_vm0, %v3042_v0  ;;  %282 = vst.msk [vmem:[#allocation2 + $0x98] sm:$0xff] %vm262_vm0, %v3042_v0  ;;  %v2718_v20 = vld [vmem:[%s3254_s8 + $0xc0] sm:$0xff]   ;;  %v2720_v22 = vld [vmem:[%s3254_s8 + $0xc8] sm:$0xff]   ;;  %p2952_p1 = pneg %p2951_p11 }
  0x7b   : > { %283 = vst.msk [vmem:[#allocation2 + $0xa0] sm:$0xff] %vm262_vm0, %v3042_v0  ;;  %284 = vst.msk [vmem:[#allocation2 + $0xa8] sm:$0xff] %vm262_vm0, %v3042_v0  ;;  %v2721_v23 = vld [vmem:[%s3254_s8 + $0x50] sm:$0xff]   ;;  %v2723_v25 = vld [vmem:[%s3254_s8 + $0x58] sm:$0xff]   ;;  %p2958_p2 = por %p2957_p6, %p2956_p0 }
  0x7c   : > { %285 = vst.msk [vmem:[#allocation2 + $0xb0] sm:$0xff] %vm262_vm0, %v3042_v0  ;;  %286 = vst.msk [vmem:[#allocation2 + $0xb8] sm:$0xff] %vm262_vm0, %v3042_v0  ;;  %v2722_v24 = vld [vmem:[%s3254_s8 + $0xd0] sm:$0xff]   ;;  %v2724_v26 = vld [vmem:[%s3254_s8 + $0xd8] sm:$0xff]  }
  0x7d   : > { %287 = vst.msk [vmem:[#allocation2 + $0xc0] sm:$0xff] %vm262_vm0, %v3042_v0  ;;  %288 = vst.msk [vmem:[#allocation2 + $0xc8] sm:$0xff] %vm262_vm0, %v3042_v0  ;;  %v2725_v27 = vld [vmem:[%s3254_s8 + $0x60] sm:$0xff]   ;;  %v2727_v29 = vld [vmem:[%s3254_s8 + $0x68] sm:$0xff]   ;;  %p2959_p9 = pnand %p2958_p2, %p2952_p1 }
  0x7e   : > { %289 = vst.msk [vmem:[#allocation2 + $0xd0] sm:$0xff] %vm262_vm0, %v3042_v0  ;;  %290 = vst.msk [vmem:[#allocation2 + $0xd8] sm:$0xff] %vm262_vm0, %v3042_v0  ;;  %2550 = vmatmul.mubr.msk.bf16.gmra.mrb[4].mxu0 %vm262_vm0, %v2707_v9  ;;  %2582 = vmatmul.mubr.msk.bf16.gmra.mrb[4].mxu1 %vm262_vm0, %v2708_v10  ;;  %v2726_v28 = vld [vmem:[%s3254_s8 + $0xe0] sm:$0xff]   ;;  %v2728_v30 = vld [vmem:[%s3254_s8 + $0xe8] sm:$0xff]  }
  0x7f   : > { %291 = vst.msk [vmem:[#allocation2 + $0xe0] sm:$0xff] %vm262_vm0, %v3042_v0  ;;  %292 = vst.msk [vmem:[#allocation2 + $0xe8] sm:$0xff] %vm262_vm0, %v3042_v0  ;;  %2553 = vmatprep.mubr.msk.bf16.mxu0 %vm262_vm0, %v2709_v11  ;;  %2585 = vmatprep.mubr.msk.bf16.mxu1 %vm262_vm0, %v2710_v12  ;;  %v2729_v31 = vld [vmem:[%s3254_s8 + $0x70] sm:$0xff]   ;;  %v2731_v33 = vld [vmem:[%s3254_s8 + $0x78] sm:$0xff]  }
  0x80   : > { %293 = vst.msk [vmem:[#allocation2 + $0xf0] sm:$0xff] %vm262_vm0, %v3042_v0  ;;  %294 = vst.msk [vmem:[#allocation2 + $0xf8] sm:$0xff] %vm262_vm0, %v3042_v0  ;;  %v2730_v32 = vld [vmem:[%s3254_s8 + $0xf0] sm:$0xff]   ;;  %v2732_v34 = vld [vmem:[%s3254_s8 + $0xf8] sm:$0xff]  }
  0x81   : > { %295 = vst.msk [vmem:[#allocation2 + $0x100] sm:$0xff] %vm262_vm0, %v3042_v0  ;;  %296 = vst.msk [vmem:[#allocation2 + $0x108] sm:$0xff] %vm262_vm0, %v3042_v0  ;;  %v329_v35 = vld [vmem:[#allocation2 + $0x10] sm:$0xff]  ;;  %v327_v37 = vld [vmem:[#allocation2] sm:$0xff] }
  0x82   : > { %297 = vst.msk [vmem:[#allocation2 + $0x110] sm:$0xff] %vm262_vm0, %v3042_v0  ;;  %298 = vst.msk [vmem:[#allocation2 + $0x118] sm:$0xff] %vm262_vm0, %v3042_v0  ;;  %v330_v40 = vld [vmem:[#allocation2 + $0x18] sm:$0xff]  ;;  %v328_v45 = vld [vmem:[#allocation2 + $0x8] sm:$0xff] }
  0x83   : > { %299 = vst.msk [vmem:[#allocation2 + $0x120] sm:$0xff] %vm262_vm0, %v3042_v0  ;;  %300 = vst.msk [vmem:[#allocation2 + $0x128] sm:$0xff] %vm262_vm0, %v3042_v0  ;;  %v333_v59 = vld [vmem:[#allocation2 + $0x30] sm:$0xff]  ;;  %v331_v61 = vld [vmem:[#allocation2 + $0x20] sm:$0xff] }
  0x84   : > { %301 = vst.msk [vmem:[#allocation2 + $0x130] sm:$0xff] %vm262_vm0, %v3042_v0  ;;  %302 = vst.msk [vmem:[#allocation2 + $0x138] sm:$0xff] %vm262_vm0, %v3042_v0  ;;  %v3464_v62 = vld [vmem:[#allocation8] ss:$0 sm:$0xff]  ;;  %v334_v1 = vld [vmem:[#allocation2 + $0x38] sm:$0xff] }
  0x85   : > { %303 = vst.msk [vmem:[#allocation2 + $0x140] sm:$0xff] %vm262_vm0, %v3042_v0  ;;  %304 = vst.msk [vmem:[#allocation2 + $0x148] sm:$0xff] %vm262_vm0, %v3042_v0  ;;  %v332_v6 = vld [vmem:[#allocation2 + $0x28] sm:$0xff] }
  0x86   : > { %305 = vst.msk [vmem:[#allocation2 + $0x150] sm:$0xff] %vm262_vm0, %v3042_v0  ;;  %306 = vst.msk [vmem:[#allocation2 + $0x158] sm:$0xff] %vm262_vm0, %v3042_v0  ;;  %2554 = vmatmul.mubr.msk.bf16.gmra.mrb[8].mxu0 %vm262_vm0, %v2711_v13  ;;  %2586 = vmatmul.mubr.msk.bf16.gmra.mrb[8].mxu1 %vm262_vm0, %v2712_v14 }
  0x87   : > { %307 = vst.msk [vmem:[#allocation2 + $0x160] sm:$0xff] %vm262_vm0, %v3042_v0  ;;  %308 = vst.msk [vmem:[#allocation2 + $0x168] sm:$0xff] %vm262_vm0, %v3042_v0  ;;  %2557 = vmatprep.mubr.msk.bf16.mxu0 %vm262_vm0, %v2713_v15  ;;  %2589 = vmatprep.mubr.msk.bf16.mxu1 %vm262_vm0, %v2714_v16 }
  0x88   : > { %309 = vst.msk [vmem:[#allocation2 + $0x170] sm:$0xff] %vm262_vm0, %v3042_v0  ;;  %310 = vst.msk [vmem:[#allocation2 + $0x178] sm:$0xff] %vm262_vm0, %v3042_v0  ;;  %v359_v39 = vld [vmem:[#allocation2 + $0x100] sm:$0xff]  ;;  %v360_v50 = vld [vmem:[#allocation2 + $0x108] sm:$0xff] }
  0x89   : > { %311 = vst.msk [vmem:[#allocation2 + $0x180] sm:$0xff] %vm262_vm0, %v3042_v0  ;;  %312 = vst.msk [vmem:[#allocation2 + $0x188] sm:$0xff] %vm262_vm0, %v3042_v0  ;;  %v361_v36 = vld [vmem:[#allocation2 + $0x110] sm:$0xff]  ;;  %v362_v44 = vld [vmem:[#allocation2 + $0x118] sm:$0xff] }
  0x8a   : > { %313 = vst.msk [vmem:[#allocation2 + $0x190] sm:$0xff] %vm262_vm0, %v3042_v0  ;;  %314 = vst.msk [vmem:[#allocation2 + $0x198] sm:$0xff] %vm262_vm0, %v3042_v0 }
  0x8b   : > { %315 = vst.msk [vmem:[#allocation2 + $0x1a0] sm:$0xff] %vm262_vm0, %v3042_v0  ;;  %316 = vst.msk [vmem:[#allocation2 + $0x1a8] sm:$0xff] %vm262_vm0, %v3042_v0  ;;  %v365_v60 = vld [vmem:[#allocation2 + $0x130] sm:$0xff]  ;;  %v366_v5 = vld [vmem:[#allocation2 + $0x138] sm:$0xff] }
  0x8c   : > { %317 = vst.msk [vmem:[#allocation2 + $0x1b0] sm:$0xff] %vm262_vm0, %v3042_v0  ;;  %318 = vst.msk [vmem:[#allocation2 + $0x1b8] sm:$0xff] %vm262_vm0, %v3042_v0 }
  0x8d   : > { %319 = vst.msk [vmem:[#allocation2 + $0x1c0] sm:$0xff] %vm262_vm0, %v3042_v0  ;;  %320 = vst.msk [vmem:[#allocation2 + $0x1c8] sm:$0xff] %vm262_vm0, %v3042_v0 }
  0x8e   : > { %321 = vst.msk [vmem:[#allocation2 + $0x1d0] sm:$0xff] %vm262_vm0, %v3042_v0  ;;  %322 = vst.msk [vmem:[#allocation2 + $0x1d8] sm:$0xff] %vm262_vm0, %v3042_v0  ;;  %2558 = vmatmul.mubr.msk.bf16.gmra.mrb[12].mxu0 %vm262_vm0, %v2715_v17  ;;  %2590 = vmatmul.mubr.msk.bf16.gmra.mrb[12].mxu1 %vm262_vm0, %v2716_v18 }
  0x8f   : > { %323 = vst.msk [vmem:[#allocation2 + $0x1e0] sm:$0xff] %vm262_vm0, %v3042_v0  ;;  %324 = vst.msk [vmem:[#allocation2 + $0x1e8] sm:$0xff] %vm262_vm0, %v3042_v0  ;;  %2561 = vmatprep.mubr.msk.bf16.mxu0 %vm262_vm0, %v2717_v19  ;;  %2593 = vmatprep.mubr.msk.bf16.mxu1 %vm262_vm0, %v2718_v20 }
  0x90   : > { %325 = vst.msk [vmem:[#allocation2 + $0x1f0] sm:$0xff] %vm262_vm0, %v3042_v0  ;;  %326 = vst.msk [vmem:[#allocation2 + $0x1f8] sm:$0xff] %vm262_vm0, %v3042_v0  ;;  %v363_v0 = vld [vmem:[#allocation2 + $0x120] sm:$0xff] }
  0x96   : > { %2562 = vmatmul.mubr.msk.bf16.gmra.mrb[16].mxu0 %vm262_vm0, %v2719_v21  ;;  %2594 = vmatmul.mubr.msk.bf16.gmra.mrb[16].mxu1 %vm262_vm0, %v2720_v22 }
  0x97   : > { %2565 = vmatprep.mubr.msk.bf16.mxu0 %vm262_vm0, %v2721_v23  ;;  %2597 = vmatprep.mubr.msk.bf16.mxu1 %vm262_vm0, %v2722_v24 }
  0x9e   : > { %2566 = vmatmul.mubr.msk.bf16.gmra.mrb[20].mxu0 %vm262_vm0, %v2723_v25  ;;  %2598 = vmatmul.mubr.msk.bf16.gmra.mrb[20].mxu1 %vm262_vm0, %v2724_v26 }
  0x9f   : > { %2569 = vmatprep.mubr.msk.bf16.mxu0 %vm262_vm0, %v2725_v27  ;;  %2601 = vmatprep.mubr.msk.bf16.mxu1 %vm262_vm0, %v2726_v28 }
  0xa6   : > { %2570 = vmatmul.mubr.msk.bf16.gmra.mrb[24].mxu0 %vm262_vm0, %v2727_v29  ;;  %2602 = vmatmul.mubr.msk.bf16.gmra.mrb[24].mxu1 %vm262_vm0, %v2728_v30 }
  0xa7   : > { %2573 = vmatprep.mubr.msk.bf16.mxu0 %vm262_vm0, %v2729_v31  ;;  %2605 = vmatprep.mubr.msk.bf16.mxu1 %vm262_vm0, %v2730_v32 }
  0xae   : > { %2574 = vmatmul.mubr.msk.bf16.gmra.mrb[28].mxu0 %vm262_vm0, %v2731_v33  ;;  %2606 = vmatmul.mubr.msk.bf16.gmra.mrb[28].mxu1 %vm262_vm0, %v2732_v34 }
 0x149   : > { %v2547_v38 = vpop.f32.mrb[0].mxu0  ;;  %v2579_v42 = vpop.f32.mrb[0].mxu1 }
 0x14a   : > { %v1008_v41 = vadd.f32 %v2547_v38, %v329_v35  ;;  %v751_v43 = vpop.f32.mrb[1].mxu0  ;;  %v1040_v46 = vadd.f32 %v2579_v42, %v361_v36  ;;  %v879_v48 = vpop.f32.mrb[1].mxu1 }
 0x14b   : > { %v1006_v47 = vadd.f32 %v751_v43, %v327_v37  ;;  %v2548_v49 = vpop.f32.mrb[2].mxu0  ;;  %v1038_v51 = vadd.f32 %v879_v48, %v359_v39  ;;  %v2580_v53 = vpop.f32.mrb[2].mxu1 }
 0x14c   : > { %1072 = vst.msk [vmem:[#allocation2 + $0x10] sm:$0xff] %vm262_vm0, %v1008_v41  ;;  %v1009_v52 = vadd.f32 %v2548_v49, %v330_v40  ;;  %v754_v54 = vpop.f32.mrb[3].mxu0  ;;  %1104 = vst.msk [vmem:[#allocation2 + $0x110] sm:$0xff] %vm262_vm0, %v1040_v46  ;;  %v1041_v55 = vadd.f32 %v2580_v53, %v362_v44  ;;  %v882_v57 = vpop.f32.mrb[3].mxu1 }
 0x14d   : > { %1070 = vst.msk [vmem:[#allocation2] sm:$0xff] %vm262_vm0, %v1006_v47  ;;  %v1007_v56 = vadd.f32 %v754_v54, %v328_v45  ;;  %1102 = vst.msk [vmem:[#allocation2 + $0x100] sm:$0xff] %vm262_vm0, %v1038_v51  ;;  %v1039_v58 = vadd.f32 %v882_v57, %v360_v50 }
 0x14e   : > { %1073 = vst.msk [vmem:[#allocation2 + $0x18] sm:$0xff] %vm262_vm0, %v1009_v52  ;;  %1105 = vst.msk [vmem:[#allocation2 + $0x118] sm:$0xff] %vm262_vm0, %v1041_v55 }
 0x14f   : > { %1071 = vst.msk [vmem:[#allocation2 + $0x8] sm:$0xff] %vm262_vm0, %v1007_v56  ;;  %1103 = vst.msk [vmem:[#allocation2 + $0x108] sm:$0xff] %vm262_vm0, %v1039_v58 }
 0x151   : > { %v2551_v63 = vpop.f32.mrb[4].mxu0  ;;  %v2583_v3 = vpop.f32.mrb[4].mxu1 }
 0x152   : > { %v1012_v2 = vadd.f32 %v2551_v63, %v333_v59  ;;  %v767_v4 = vpop.f32.mrb[5].mxu0  ;;  %v1044_v8 = vadd.f32 %v2583_v3, %v365_v60  ;;  %v895_v10 = vpop.f32.mrb[5].mxu1 }
 0x153   : > { %v1139_v7 = vld [vmem:[#allocation2 + $0x10] sm:$0xff]  ;;  %v1010_v9 = vadd.f32 %v767_v4, %v331_v61  ;;  %v2552_v11 = vpop.f32.mrb[6].mxu0  ;;  %v1042_v15 = vadd.f32 %v895_v10, %v363_v0  ;;  %v2584_v17 = vpop.f32.mrb[6].mxu1 }
 0x154   : > { %v1210_v12 = vadd.f32 %v3464_v62, %v1139_v7  ;;  %v1171_v13 = vld [vmem:[#allocation2 + $0x110] sm:$0xff]  ;;  %v1137_v14 = vld [vmem:[#allocation2] sm:$0xff]  ;;  %1076 = vst.msk [vmem:[#allocation2 + $0x30] sm:$0xff] %vm262_vm0, %v1012_v2  ;;  %v1013_v16 = vadd.f32 %v2552_v11, %v334_v1  ;;  %v770_v18 = vpop.f32.mrb[7].mxu0  ;;  %1108 = vst.msk [vmem:[#allocation2 + $0x130] sm:$0xff] %vm262_vm0, %v1044_v8  ;;  %v1045_v23 = vadd.f32 %v2584_v17, %v366_v5  ;;  %v3472_v25 = vpop.f32.mrb[7].mxu1 }
 0x155   : > { %v1242_v19 = vadd.f32 %v3464_v62, %v1171_v13  ;;  %v1208_v20 = vadd.f32 %v3464_v62, %v1137_v14  ;;  %v1169_v21 = vld [vmem:[#allocation2 + $0x100] sm:$0xff]  ;;  %v1140_v22 = vld [vmem:[#allocation2 + $0x18] sm:$0xff]  ;;  %1074 = vst.msk [vmem:[#allocation2 + $0x20] sm:$0xff] %vm262_vm0, %v1010_v9  ;;  %v1011_v24 = vadd.f32 %v770_v18, %v332_v6  ;;  %1106 = vst.msk [vmem:[#allocation2 + $0x120] sm:$0xff] %vm262_vm0, %v1042_v15 }
 0x156   : > { %v1338_v26 = vmul.f32 0.044715, %v1210_v12  ;;  %v1240_v27 = vadd.f32 %v3464_v62, %v1169_v21  ;;  %v1211_v28 = vadd.f32 %v3464_v62, %v1140_v22  ;;  %v1172_v29 = vld [vmem:[#allocation2 + $0x118] sm:$0xff]  ;;  %1077 = vst.msk [vmem:[#allocation2 + $0x38] sm:$0xff] %vm262_vm0, %v1013_v16  ;;  %v3478_v30 = vmul.f32 0.5, %v1210_v12  ;;  %v1138_v33 = vld [vmem:[#allocation2 + $0x8] sm:$0xff] }
 0x157   : > { %v1370_v31 = vmul.f32 0.044715, %v1242_v19  ;;  %v1336_v32 = vmul.f32 0.044715, %v1208_v20  ;;  %1109 = vst.msk [vmem:[#allocation2 + $0x138] sm:$0xff] %vm262_vm0, %v1045_v23  ;;  %1075 = vst.msk [vmem:[#allocation2 + $0x28] sm:$0xff] %vm262_vm0, %v1011_v24  ;;  %v1243_v41 = vadd.f32 %v3464_v62, %v1172_v29  ;;  %v1209_v47 = vadd.f32 %v3464_v62, %v1138_v33 }
 0x158   : > { %v1402_v34 = vmul.f32 %v1338_v26, %v1210_v12  ;;  %v3482_v35 = vmul.f32 0.5, %v1242_v19  ;;  %v3484_v36 = vmul.f32 0.5, %v1208_v20  ;;  %v1368_v37 = vmul.f32 0.044715, %v1240_v27  ;;  %v1170_v42 = vld [vmem:[#allocation2 + $0x108] sm:$0xff] }
 0x159   : > { %v1434_v38 = vmul.f32 %v1370_v31, %v1242_v19  ;;  %v1400_v39 = vmul.f32 %v1336_v32, %v1208_v20  ;;  %v1339_v40 = vmul.f32 0.044715, %v1211_v28  ;;  %v3487_v43 = vpop.f32.mrb[8].mxu0  ;;  %v3489_v45 = vmul.f32 0.5, %v1240_v27  ;;  %v3492_v48 = vpop.f32.mrb[8].mxu1 }
 0x15a   : > { %v1466_v44 = vmul.f32 %v1402_v34, %v1210_v12  ;;  %v1432_v46 = vmul.f32 %v1368_v37, %v1240_v27  ;;  %v3494_v49 = vpop.f32.mrb[9].mxu0  ;;  %v3496_v52 = vmul.f32 0.5, %v1211_v28  ;;  %v3498_v54 = vpop.f32.mrb[9].mxu1  ;;  %v1371_v58 = vmul.f32 0.044715, %v1243_v41 }
 0x15b   : > { %v1498_v50 = vmul.f32 %v1434_v38, %v1242_v19  ;;  %v1464_v51 = vmul.f32 %v1400_v39, %v1208_v20  ;;  %v1403_v53 = vmul.f32 %v1339_v40, %v1211_v28  ;;  %v3500_v55 = vpop.f32.mrb[10].mxu0  ;;  %v1241_v59 = vadd.f32 %v3464_v62, %v1170_v42  ;;  %v3503_v60 = vpop.f32.mrb[10].mxu1  ;;  %v1143_v8 = vld [vmem:[#allocation2 + $0x30] sm:$0xff] }
 0x15c   : > { %v1530_v56 = vadd.f32 %v1466_v44, %v1210_v12  ;;  %v1496_v57 = vmul.f32 %v1432_v46, %v1240_v27  ;;  %v1337_v1 = vmul.f32 0.044715, %v1209_v47  ;;  %v3505_v2 = vpop.f32.mrb[11].mxu0  ;;  %v3507_v3 = vpop.f32.mrb[11].mxu1  ;;  %v3509_v6 = vmul.f32 0.5, %v1243_v41  ;;  %v1175_v13 = vld [vmem:[#allocation2 + $0x130] sm:$0xff] }
 0x15d   : > { %v1562_v61 = vadd.f32 %v1498_v50, %v1242_v19  ;;  %v1528_v63 = vadd.f32 %v1464_v51, %v1208_v20  ;;  %v1467_v0 = vmul.f32 %v1403_v53, %v1211_v28  ;;  %v1435_v7 = vmul.f32 %v1371_v58, %v1243_v41  ;;  %v1141_v24 = vld [vmem:[#allocation2 + $0x20] sm:$0xff]  ;;  %v1144_v32 = vld [vmem:[#allocation2 + $0x38] sm:$0xff] }
 0x15e   : > { %v1594_v4 = vmul.f32 0.7978846, %v1530_v56  ;;  %v1560_v5 = vadd.f32 %v1496_v57, %v1240_v27  ;;  %v1401_v12 = vmul.f32 %v1337_v1, %v1209_v47  ;;  %v1369_v16 = vmul.f32 0.044715, %v1241_v59  ;;  %v1173_v31 = vld [vmem:[#allocation2 + $0x120] sm:$0xff] }
 0x15f   : > { %v1626_v9 = vmul.f32 0.7978846, %v1562_v61  ;;  %v1592_v10 = vmul.f32 0.7978846, %v1528_v63  ;;  %v1531_v11 = vadd.f32 %v1467_v0, %v1211_v28  ;;  %v1499_v15 = vmul.f32 %v1435_v7, %v1243_v41  ;;  %v1176_v63 = vld [vmem:[#allocation2 + $0x138] sm:$0xff] }
 0x160   : > { %2733 = vtanh.f32 %v1594_v4  ;;  %v1624_v14 = vmul.f32 0.7978846, %v1560_v5  ;;  %v1465_v18 = vmul.f32 %v1401_v12, %v1209_v47  ;;  %v1214_v19 = vadd.f32 %v3464_v62, %v1143_v8 }
 0x161   : > { %2735 = vtanh.f32 %v1626_v9  ;;  %v1595_v17 = vmul.f32 0.7978846, %v1531_v11  ;;  %v3512_v20 = vpop.f32.mrb[12].mxu0  ;;  %v1563_v21 = vadd.f32 %v1499_v15, %v1243_v41  ;;  %v1433_v22 = vmul.f32 %v1369_v16, %v1241_v59  ;;  %v3515_v26 = vpop.f32.mrb[12].mxu1  ;;  %v1142_v11 = vld [vmem:[#allocation2 + $0x28] sm:$0xff] }
 0x162   : > { %2737 = vtanh.f32 %v1592_v10  ;;  %v1246_v23 = vadd.f32 %v3464_v62, %v1175_v13  ;;  %v3517_v27 = vpop.f32.mrb[13].mxu0  ;;  %v1529_v28 = vadd.f32 %v1465_v18, %v1209_v47  ;;  %v1342_v29 = vmul.f32 0.044715, %v1214_v19  ;;  %v3519_v33 = vpop.f32.mrb[13].mxu1 }
 0x163   : > { %2739 = vtanh.f32 %v1624_v14  ;;  %v3521_v34 = vpop.f32.mrb[14].mxu0  ;;  %v1627_v37 = vmul.f32 0.7978846, %v1563_v21  ;;  %v3523_v38 = vmul.f32 0.5, %v1209_v47  ;;  %v1497_v39 = vmul.f32 %v1433_v22, %v1241_v59  ;;  %v3525_v40 = vpop.f32.mrb[14].mxu1 }
 0x164   : > { %2741 = vtanh.f32 %v1595_v17  ;;  %v3527_v41 = vpop.f32.mrb[15].mxu0  ;;  %v1593_v42 = vmul.f32 0.7978846, %v1529_v28  ;;  %v1406_v44 = vmul.f32 %v1342_v29, %v1214_v19  ;;  %v1374_v46 = vmul.f32 0.044715, %v1246_v23  ;;  %v3530_v51 = vpop.f32.mrb[15].mxu1 }
 0x165   : > { %v1212_v50 = vadd.f32 %v3464_v62, %v1141_v24  ;;  %2743 = vtanh.f32 %v1627_v37  ;;  %v1561_v53 = vadd.f32 %v1497_v39, %v1241_v59  ;;  %v3533_v56 = vadd.f32 %v3464_v62, %v1173_v31 }
 0x166   : > { %v3536_v47 = vadd.f32 %v3464_v62, %v1144_v32  ;;  %2745 = vtanh.f32 %v1593_v42  ;;  %v3538_v57 = vmul.f32 0.5, %v1241_v59  ;;  %v1470_v58 = vmul.f32 %v1406_v44, %v1214_v19 }
 0x167   : > { %v1438_v61 = vmul.f32 %v1374_v46, %v1246_v23  ;;  %v1625_v0 = vmul.f32 0.7978846, %v1561_v53  ;;  %v3540_v1 = vmul.f32 0.5, %v1214_v19  ;;  %v3542_v4 = vmul.f32 0.5, %v1246_v23 }
 0x168   : > { %v1340_v5 = vmul.f32 0.044715, %v1212_v50  ;;  %v1534_v7 = vadd.f32 %v1470_v58, %v1214_v19  ;;  %v1372_v9 = vmul.f32 0.044715, %v3533_v56  ;;  %v1343_v10 = vmul.f32 0.044715, %v3536_v47 }
 0x169   : > { %v1502_v8 = vmul.f32 %v1438_v61, %v1246_v23  ;;  %v3546_v12 = vpop.f32.mrb[16].mxu0  ;;  %2747 = vtanh.f32 %v1625_v0  ;;  %v3548_v13 = vmul.f32 0.5, %v1212_v50  ;;  %v3551_v15 = vadd.f32 %v3464_v62, %v1176_v63  ;;  %v3553_v16 = vpop.f32.mrb[16].mxu1 }
 0x16a   : > { %v2734_v59 = vpop.eup %2733  ;;  %v1404_v14 = vmul.f32 %v1340_v5, %v1212_v50  ;;  %v3555_v17 = vpop.f32.mrb[17].mxu0  ;;  %v1598_v21 = vmul.f32 0.7978846, %v1534_v7  ;;  %v1436_v24 = vmul.f32 %v1372_v9, %v3533_v56  ;;  %v1407_v39 = vmul.f32 %v1343_v10, %v3536_v47 }
 0x16b   : > { %v2736_v18 = vpop.eup %2735  ;;  %v1722_v19 = vadd.f32 1.0, %v2734_v59  ;;  %v1566_v22 = vadd.f32 %v1502_v8, %v1246_v23  ;;  %v3558_v28 = vpop.f32.mrb[17].mxu1  ;;  %v3564_v42 = vadd.f32 %v3464_v62, %v1142_v11 }
 0x16c   : > { %v3560_v29 = vpop.f32.mrb[18].mxu0  ;;  %v2738_v31 = vpop.eup %2737  ;;  %v1754_v32 = vadd.f32 1.0, %v2736_v18  ;;  %v1468_v37 = vmul.f32 %v1404_v14, %v1212_v50  ;;  %2749 = vtanh.f32 %v1598_v21  ;;  %v1500_v9 = vmul.f32 %v1436_v24, %v3533_v56 }
 0x16d   : > { %v3566_v44 = vpop.f32.mrb[18].mxu1  ;;  %v3568_v46 = vpop.f32.mrb[19].mxu0  ;;  %v1786_v23 = vmul.f32 %v1722_v19, %v3478_v30  ;;  %v1720_v58 = vadd.f32 1.0, %v2738_v31  ;;  %v1630_v61 = vmul.f32 0.7978846, %v1566_v22  ;;  %v1471_v24 = vmul.f32 %v1407_v39, %v3536_v47 }
 0x16e   : > { %v2740_v53 = vpop.eup %2739  ;;  %v3571_v63 = vpop.f32.mrb[19].mxu1  ;;  %v1818_v5 = vmul.f32 %v1754_v32, %v3482_v35  ;;  %v1532_v8 = vadd.f32 %v1468_v37, %v1212_v50  ;;  %v1564_v21 = vadd.f32 %v1500_v9, %v3533_v56 }
 0x16f   : > { %v2742_v0 = vpop.eup %2741  ;;  %v1752_v7 = vadd.f32 1.0, %v2740_v53  ;;  %v2447_v10 = vpack.c.bf16 %v1786_v23, %v1786_v23  ;;  %v1784_v11 = vmul.f32 %v1720_v58, %v3484_v36  ;;  %2751 = vtanh.f32 %v1630_v61 }
 0x170   : > { %v1723_v59 = vadd.f32 1.0, %v2742_v0  ;;  %v2744_v14 = vpop.eup %2743  ;;  %v2479_v30 = vpack.c.bf16 %v1818_v5, %v1818_v5  ;;  %v1596_v19 = vmul.f32 0.7978846, %v1532_v8  ;;  %v1628_v37 = vmul.f32 0.7978846, %v1564_v21  ;;  %v364_v0 = vld [vmem:[#allocation2 + $0x128] sm:$0xff] }
 0x171   : > { %v1816_v18 = vmul.f32 %v1752_v7, %v3489_v45  ;;  %v2746_v22 = vpop.eup %2745  ;;  %2107 = vst.msk [vmem:[%s3580_s21 + $0x8] sm:$0xf] %vm2104_vm2, %v2447_v10  ;;  %v2445_v35 = vpack.c.bf16 %v1784_v11, %v1784_v11  ;;  %v1755_v50 = vadd.f32 1.0, %v2744_v14  ;;  %v3586_v31 = vpop.f32.mrb[20].mxu0  ;;  %v1535_v39 = vadd.f32 %v1471_v24, %v3536_v47  ;;  %v337_v5 = vld [vmem:[#allocation2 + $0x50] sm:$0xff] }
 0x172   : > { %v1787_v36 = vmul.f32 %v1723_v59, %v3496_v52  ;;  %2139 = vst.msk [vmem:[%s3580_s21 + $0x88] sm:$0xf] %vm2104_vm2, %v2479_v30  ;;  %v1721_v32 = vadd.f32 1.0, %v2746_v22  ;;  %2753 = vtanh.f32 %v1596_v19  ;;  %v3590_v53 = vpop.f32.mrb[20].mxu1  ;;  %v3592_v23 = vpop.f32.mrb[21].mxu0  ;;  %v3607_v11 = vmul.f32 0.5, %v3533_v56 }
 0x173   : > { %v2477_v45 = vpack.c.bf16 %v1816_v18, %v1816_v18  ;;  %2105 = vst.msk [vmem:[%s3580_s21] sm:$0xf] %vm2104_vm2, %v2445_v35  ;;  %v1819_v52 = vmul.f32 %v1755_v50, %v3509_v6  ;;  %v1375_v61 = vmul.f32 0.044715, %v3551_v15  ;;  %v3599_v7 = vpop.f32.mrb[21].mxu1  ;;  %v3601_v8 = vpop.f32.mrb[22].mxu0  ;;  %2755 = vtanh.f32 %v1628_v37 }
 0x174   : > { %v2448_v58 = vpack.c.bf16 %v1787_v36, %v1787_v36  ;;  %v2748_v9 = vpop.eup %2747  ;;  %v1785_v10 = vmul.f32 %v1721_v32, %v3523_v38  ;;  %v1341_v6 = vmul.f32 0.044715, %v3564_v42  ;;  %v369_v59 = vld [vmem:[#allocation2 + $0x150] sm:$0xff]  ;;  %v3610_v14 = vpop.f32.mrb[22].mxu1  ;;  %v1599_v21 = vmul.f32 0.7978846, %v1535_v39 }
 0x175   : > { %2137 = vst.msk [vmem:[%s3580_s21 + $0x80] sm:$0xf] %vm2104_vm2, %v2477_v45  ;;  %v3612_v30 = vpop.f32.mrb[23].mxu0  ;;  %v2480_v18 = vpack.c.bf16 %v1819_v52, %v1819_v52  ;;  %v1753_v19 = vadd.f32 1.0, %v2748_v9  ;;  %v1439_v22 = vmul.f32 %v1375_v61, %v3551_v15  ;;  %v335_v38 = vld [vmem:[#allocation2 + $0x40] sm:$0xff]  ;;  %v3617_v35 = vpop.f32.mrb[23].mxu1  ;;  %v1043_v24 = vadd.f32 %v3472_v25, %v364_v0 }
 0x176   : > { %2108 = vst.msk [vmem:[%s3580_s21 + $0xc] sm:$0xf] %vm2104_vm2, %v2448_v58  ;;  %v367_v56 = vld [vmem:[#allocation2 + $0x140] sm:$0xff]  ;;  %v2446_v36 = vpack.c.bf16 %v1785_v10, %v1785_v10  ;;  %v1405_v50 = vmul.f32 %v1341_v6, %v3564_v42  ;;  %v1016_v45 = vadd.f32 %v3487_v43, %v337_v5  ;;  %v338_v32 = vld [vmem:[#allocation2 + $0x58] sm:$0xff]  ;;  %v2750_v58 = vpop.eup %2749  ;;  %2757 = vtanh.f32 %v1599_v21  ;;  %v336_v9 = vld [vmem:[#allocation2 + $0x48] sm:$0xff] }
 0x177   : > { %v370_v37 = vld [vmem:[#allocation2 + $0x158] sm:$0xff]  ;;  %2140 = vst.msk [vmem:[%s3580_s21 + $0x8c] sm:$0xf] %vm2104_vm2, %v2480_v18  ;;  %v1817_v52 = vmul.f32 %v1753_v19, %v3538_v57  ;;  %v1503_v39 = vmul.f32 %v1439_v22, %v3551_v15  ;;  %v1048_v61 = vadd.f32 %v3492_v48, %v369_v59  ;;  %v1726_v10 = vadd.f32 1.0, %v2750_v58  ;;  %v368_v57 = vld [vmem:[#allocation2 + $0x148] sm:$0xff]  ;;  %v341_v5 = vld [vmem:[#allocation2 + $0x70] sm:$0xff] }
 0x178   : > { %2106 = vst.msk [vmem:[%s3580_s21 + $0x4] sm:$0xf] %vm2104_vm2, %v2446_v36  ;;  %v1469_v25 = vmul.f32 %v1405_v50, %v3564_v42  ;;  %v1014_v43 = vadd.f32 %v3494_v49, %v335_v38  ;;  %v1046_v0 = vadd.f32 %v3498_v54, %v367_v56  ;;  %v373_v6 = vld [vmem:[#allocation2 + $0x170] sm:$0xff]  ;;  %v1017_v59 = vadd.f32 %v3500_v55, %v338_v32  ;;  %v339_v22 = vld [vmem:[#allocation2 + $0x60] sm:$0xff]  ;;  %v340_v58 = vld [vmem:[#allocation2 + $0x68] sm:$0xff] }
 0x179   : > { %1107 = vst.msk [vmem:[#allocation2 + $0x128] sm:$0xff] %vm262_vm0, %v1043_v24  ;;  %1080 = vst.msk [vmem:[#allocation2 + $0x50] sm:$0xff] %vm262_vm0, %v1016_v45  ;;  %v2752_v18 = vpop.eup %2751  ;;  %v2478_v19 = vpack.c.bf16 %v1817_v52, %v1817_v52  ;;  %v1567_v48 = vadd.f32 %v1503_v39, %v3551_v15  ;;  %v1049_v21 = vadd.f32 %v3503_v60, %v370_v37  ;;  %v3638_v36 = vpop.f32.mrb[24].mxu0  ;;  %v371_v50 = vld [vmem:[#allocation2 + $0x160] sm:$0xff]  ;;  %v342_v24 = vld [vmem:[#allocation2 + $0x78] sm:$0xff] }
 0x17a   : > { %1112 = vst.msk [vmem:[#allocation2 + $0x150] sm:$0xff] %vm262_vm0, %v1048_v61  ;;  %v1790_v49 = vmul.f32 %v1726_v10, %v3540_v1  ;;  %v1758_v54 = vadd.f32 1.0, %v2752_v18  ;;  %v1533_v38 = vadd.f32 %v1469_v25, %v3564_v42  ;;  %1078 = vst.msk [vmem:[#allocation2 + $0x40] sm:$0xff] %vm262_vm0, %v1014_v43  ;;  %v1015_v56 = vadd.f32 %v3505_v2, %v336_v9  ;;  %v3645_v45 = vpop.f32.mrb[24].mxu1  ;;  %v3647_v55 = vpop.f32.mrb[25].mxu0  ;;  %v374_v2 = vld [vmem:[#allocation2 + $0x178] sm:$0xff] }
 0x17b   : > { %1110 = vst.msk [vmem:[#allocation2 + $0x140] sm:$0xff] %vm262_vm0, %v1046_v0  ;;  %v1631_v60 = vmul.f32 0.7978846, %v1567_v48  ;;  %1081 = vst.msk [vmem:[#allocation2 + $0x58] sm:$0xff] %vm262_vm0, %v1017_v59  ;;  %v1047_v1 = vadd.f32 %v3507_v3, %v368_v57  ;;  %v1020_v32 = vadd.f32 %v3512_v20, %v341_v5  ;;  %v1052_v37 = vadd.f32 %v3515_v26, %v373_v6  ;;  %v3656_v52 = vpop.f32.mrb[25].mxu1  ;;  %v3658_v39 = vpop.f32.mrb[26].mxu0 }
 0x17c   : > { %2138 = vst.msk [vmem:[%s3580_s21 + $0x84] sm:$0xf] %vm2104_vm2, %v2478_v19  ;;  %v2754_v61 = vpop.eup %2753  ;;  %v2451_v9 = vpack.c.bf16 %v1790_v49, %v1790_v49  ;;  %v1822_v10 = vmul.f32 %v1758_v54, %v3542_v4  ;;  %v1597_v25 = vmul.f32 0.7978846, %v1533_v38  ;;  %v1018_v43 = vadd.f32 %v3517_v27, %v339_v22  ;;  %v372_v3 = vld [vmem:[#allocation2 + $0x168] sm:$0xff]  ;;  %v345_v20 = vld [vmem:[#allocation2 + $0x90] sm:$0xff] }
 0x17d   : > { %1113 = vst.msk [vmem:[#allocation2 + $0x158] sm:$0xff] %vm262_vm0, %v1049_v21  ;;  %1079 = vst.msk [vmem:[#allocation2 + $0x48] sm:$0xff] %vm262_vm0, %v1015_v56  ;;  %v3663_v0 = vpop.f32.mrb[26].mxu1  ;;  %v3665_v26 = vpop.f32.mrb[27].mxu0  ;;  %v1724_v57 = vadd.f32 1.0, %v2754_v61  ;;  %2759 = vtanh.f32 %v1631_v60  ;;  %v1050_v4 = vadd.f32 %v3519_v33, %v371_v50  ;;  %v1021_v5 = vadd.f32 %v3521_v34, %v342_v24  ;;  %v377_v27 = vld [vmem:[#allocation2 + $0x190] sm:$0xff] }
 0x17e   : > { %1111 = vst.msk [vmem:[#allocation2 + $0x148] sm:$0xff] %vm262_vm0, %v1047_v1  ;;  %1084 = vst.msk [vmem:[#allocation2 + $0x70] sm:$0xff] %vm262_vm0, %v1020_v32  ;;  %v343_v6 = vld [vmem:[#allocation2 + $0x80] sm:$0xff]  ;;  %v3672_v18 = vpop.f32.mrb[27].mxu1  ;;  %v2756_v19 = vpop.eup %2755  ;;  %v2483_v48 = vpack.c.bf16 %v1822_v10, %v1822_v10  ;;  %2761 = vtanh.f32 %v1597_v25  ;;  %v1053_v59 = vadd.f32 %v3525_v40, %v374_v2  ;;  %v1019_v21 = vadd.f32 %v3527_v41, %v340_v58 }
 0x17f   : > { %1116 = vst.msk [vmem:[#allocation2 + $0x170] sm:$0xff] %vm262_vm0, %v1052_v37  ;;  %1082 = vst.msk [vmem:[#allocation2 + $0x60] sm:$0xff] %vm262_vm0, %v1018_v43  ;;  %v375_v22 = vld [vmem:[#allocation2 + $0x180] sm:$0xff]  ;;  %v1788_v33 = vmul.f32 %v1724_v57, %v3548_v13  ;;  %v1756_v34 = vadd.f32 1.0, %v2756_v19  ;;  %v1051_v38 = vadd.f32 %v3530_v51, %v372_v3  ;;  %v1024_v56 = vadd.f32 %v3546_v12, %v345_v20 }
 0x180   : > { %2111 = vst.msk [vmem:[%s3580_s21 + $0x18] sm:$0xf] %vm2104_vm2, %v2451_v9  ;;  %v1174_v49 = vld [vmem:[#allocation2 + $0x128] sm:$0xff]  ;;  %v1147_v54 = vld [vmem:[#allocation2 + $0x50] sm:$0xff]  ;;  %2143 = vst.msk [vmem:[%s3580_s21 + $0x98] sm:$0xf] %vm2104_vm2, %v2483_v48  ;;  %v1056_v13 = vadd.f32 %v3553_v16, %v377_v27  ;;  %v1022_v24 = vadd.f32 %v3555_v17, %v343_v6  ;;  %v2758_v60 = vpop.eup %2757  ;;  %v1054_v2 = vadd.f32 %v3558_v28, %v375_v22 }
 0x181   : > { %1114 = vst.msk [vmem:[#allocation2 + $0x160] sm:$0xff] %vm262_vm0, %v1050_v4  ;;  %1085 = vst.msk [vmem:[#allocation2 + $0x78] sm:$0xff] %vm262_vm0, %v1021_v5  ;;  %v1245_v40 = vadd.f32 %v3464_v62, %v1174_v49  ;;  %v1218_v41 = vadd.f32 %v3464_v62, %v1147_v54  ;;  %v1179_v50 = vld [vmem:[#allocation2 + $0x150] sm:$0xff]  ;;  %v2449_v51 = vpack.c.bf16 %v1788_v33, %v1788_v33  ;;  %v1145_v32 = vld [vmem:[#allocation2 + $0x40] sm:$0xff]  ;;  %v3699_v58 = vpop.f32.mrb[28].mxu0  ;;  %v1279_v16 = vmul.f32 0.5, %v3536_v47 }
 0x182   : > { %1117 = vst.msk [vmem:[#allocation2 + $0x178] sm:$0xff] %vm262_vm0, %v1053_v59  ;;  %1083 = vst.msk [vmem:[#allocation2 + $0x68] sm:$0xff] %vm262_vm0, %v1019_v21  ;;  %v1820_v12 = vmul.f32 %v1756_v34, %v3607_v11  ;;  %v3694_v1 = vadd.f32 %v3464_v62, %v1179_v50  ;;  %v1177_v37 = vld [vmem:[#allocation2 + $0x140] sm:$0xff]  ;;  %v1727_v17 = vadd.f32 1.0, %v2758_v60  ;;  %v1311_v9 = vmul.f32 0.5, %v3551_v15  ;;  %v1148_v28 = vld [vmem:[#allocation2 + $0x58] sm:$0xff] }
 0x183   : > { %1115 = vst.msk [vmem:[#allocation2 + $0x168] sm:$0xff] %vm262_vm0, %v1051_v38  ;;  %1088 = vst.msk [vmem:[#allocation2 + $0x90] sm:$0xff] %vm262_vm0, %v1024_v56  ;;  %v1373_v61 = vmul.f32 0.044715, %v1245_v40  ;;  %v1346_v10 = vmul.f32 0.044715, %v1218_v41  ;;  %v3710_v3 = vadd.f32 %v3464_v62, %v1145_v32  ;;  %v3713_v20 = vadd.f32 %v3464_v62, %v1177_v37 }
 0x184   : > { %1120 = vst.msk [vmem:[#allocation2 + $0x190] sm:$0xff] %vm262_vm0, %v1056_v13  ;;  %1086 = vst.msk [vmem:[#allocation2 + $0x80] sm:$0xff] %vm262_vm0, %v1022_v24  ;;  %v2481_v11 = vpack.c.bf16 %v1820_v12, %v1820_v12  ;;  %v1378_v25 = vmul.f32 0.044715, %v3694_v1  ;;  %v1791_v43 = vmul.f32 %v1727_v17, %v1279_v16  ;;  %v3715_v57 = vpop.f32.mrb[28].mxu1  ;;  %v3717_v4 = vpop.f32.mrb[29].mxu0  ;;  %v1219_v34 = vadd.f32 %v3464_v62, %v1148_v28 }
 0x185   : > { %2109 = vst.msk [vmem:[%s3580_s21 + $0x10] sm:$0xf] %vm2104_vm2, %v2449_v51  ;;  %v1437_v47 = vmul.f32 %v1373_v61, %v1245_v40  ;;  %v1277_v15 = vmul.f32 0.5, %v3564_v42  ;;  %v3722_v5 = vmul.f32 0.5, %v1245_v40  ;;  %v1410_v27 = vmul.f32 %v1346_v10, %v1218_v41  ;;  %v1180_v19 = vld [vmem:[#allocation2 + $0x158] sm:$0xff]  ;;  %v3725_v48 = vpop.f32.mrb[29].mxu1 }
 0x186   : > { %1118 = vst.msk [vmem:[#allocation2 + $0x180] sm:$0xff] %vm262_vm0, %v1054_v2  ;;  %v1442_v6 = vmul.f32 %v1378_v25, %v3694_v1  ;;  %v3727_v59 = vpop.f32.mrb[30].mxu0  ;;  %v2452_v21 = vpack.c.bf16 %v1791_v43, %v1791_v43  ;;  %v1344_v33 = vmul.f32 0.044715, %v3710_v3  ;;  %v3731_v49 = vpop.f32.mrb[30].mxu1  ;;  %v3733_v54 = vmul.f32 0.5, %v1218_v41 }
 0x187   : > { %2141 = vst.msk [vmem:[%s3580_s21 + $0x90] sm:$0xf] %vm2104_vm2, %v2481_v11  ;;  %v1501_v22 = vmul.f32 %v1437_v47, %v1245_v40  ;;  %v2760_v42 = vpop.eup %2759  ;;  %v1474_v38 = vmul.f32 %v1410_v27, %v1218_v41  ;;  %v1376_v50 = vmul.f32 0.044715, %v3713_v20  ;;  %v3737_v13 = vpop.f32.mrb[31].mxu0  ;;  %v1251_v32 = vadd.f32 %v3464_v62, %v1180_v19 }
 0x188   : > { %v1506_v56 = vmul.f32 %v1442_v6, %v3694_v1  ;;  %v2762_v24 = vpop.eup %2761  ;;  %2112 = vst.msk [vmem:[%s3580_s21 + $0x1c] sm:$0xf] %vm2104_vm2, %v2452_v21  ;;  %v1759_v60 = vadd.f32 1.0, %v2760_v42  ;;  %v1408_v12 = vmul.f32 %v1344_v33, %v3710_v3  ;;  %v3743_v37 = vpop.f32.mrb[31].mxu1  ;;  %v1347_v28 = vmul.f32 0.044715, %v1219_v34 }
 0x189   : > { %v1565_v51 = vadd.f32 %v1501_v22, %v1245_v40  ;;  %v1725_v2 = vadd.f32 1.0, %v2762_v24  ;;  %v1538_v16 = vadd.f32 %v1474_v38, %v1218_v41  ;;  %v1440_v61 = vmul.f32 %v1376_v50, %v3713_v20  ;;  %v1146_v21 = vld [vmem:[#allocation2 + $0x48] sm:$0xff]  ;;  %v1151_v33 = vld [vmem:[#allocation2 + $0x70] sm:$0xff] }
 0x18a   : > { %v1570_v17 = vadd.f32 %v1506_v56, %v3694_v1  ;;  %v1823_v11 = vmul.f32 %v1759_v60, %v1311_v9  ;;  %v1472_v25 = vmul.f32 %v1408_v12, %v3710_v3  ;;  %v1411_v19 = vmul.f32 %v1347_v28, %v1219_v34  ;;  %v1178_v22 = vld [vmem:[#allocation2 + $0x148] sm:$0xff]  ;;  %v1183_v38 = vld [vmem:[#allocation2 + $0x170] sm:$0xff] }
 0x18b   : > { %v1629_v10 = vmul.f32 0.7978846, %v1565_v51  ;;  %v1789_v43 = vmul.f32 %v1725_v2, %v1277_v15  ;;  %v1602_v40 = vmul.f32 0.7978846, %v1538_v16  ;;  %v1504_v27 = vmul.f32 %v1440_v61, %v3713_v20 }
 0x18c   : > { %v1634_v47 = vmul.f32 0.7978846, %v1570_v17  ;;  %v2484_v6 = vpack.c.bf16 %v1823_v11, %v1823_v11  ;;  %v1536_v41 = vadd.f32 %v1472_v25, %v3710_v3  ;;  %v3751_v42 = vmul.f32 0.5, %v3694_v1  ;;  %v1149_v25 = vld [vmem:[#allocation2 + $0x60] sm:$0xff] }
 0x18d   : > { %2763 = vtanh.f32 %v1629_v10  ;;  %v2450_v9 = vpack.c.bf16 %v1789_v43, %v1789_v43  ;;  %v1568_v15 = vadd.f32 %v1504_v27, %v3713_v20  ;;  %v1475_v50 = vmul.f32 %v1411_v19, %v1219_v34 }
 0x18e   : > { %2765 = vtanh.f32 %v1602_v40  ;;  %2144 = vst.msk [vmem:[%s3580_s21 + $0x9c] sm:$0xf] %vm2104_vm2, %v2484_v6  ;;  %v1600_v56 = vmul.f32 0.7978846, %v1536_v41  ;;  %v1379_v24 = vmul.f32 0.044715, %v1251_v32  ;;  %v1217_v51 = vadd.f32 %v3464_v62, %v1146_v21 }
 0x18f   : > { %2767 = vtanh.f32 %v1634_v47  ;;  %2110 = vst.msk [vmem:[%s3580_s21 + $0x14] sm:$0xf] %vm2104_vm2, %v2450_v9  ;;  %v1632_v60 = vmul.f32 0.7978846, %v1568_v15  ;;  %v3760_v12 = vadd.f32 %v3464_v62, %v1178_v22  ;;  %v3763_v1 = vadd.f32 %v3464_v62, %v1151_v33 }
 0x190   : > { %2769 = vtanh.f32 %v1600_v56  ;;  %v1539_v2 = vadd.f32 %v1475_v50, %v1219_v34  ;;  %v1443_v16 = vmul.f32 %v1379_v24, %v1251_v32  ;;  %v3766_v17 = vadd.f32 %v3464_v62, %v1183_v38 }
 0x191   : > { %v1280_v61 = vmul.f32 0.5, %v3710_v3  ;;  %v3770_v11 = vmul.f32 0.5, %v3713_v20  ;;  %2771 = vtanh.f32 %v1632_v60  ;;  %v1345_v10 = vmul.f32 0.044715, %v1217_v51  ;;  %v1181_v3 = vld [vmem:[#allocation2 + $0x160] sm:$0xff] }
 0x192   : > { %v3772_v28 = vmul.f32 0.5, %v1219_v34  ;;  %v1603_v43 = vmul.f32 0.7978846, %v1539_v2  ;;  %v1507_v40 = vmul.f32 %v1443_v16, %v1251_v32  ;;  %v1377_v47 = vmul.f32 0.044715, %v3760_v12 }
 0x193   : > { %v3775_v27 = vmul.f32 0.5, %v1251_v32  ;;  %v1409_v6 = vmul.f32 %v1345_v10, %v1217_v51  ;;  %v1350_v41 = vmul.f32 0.044715, %v3763_v1  ;;  %v1382_v19 = vmul.f32 0.044715, %v3766_v17 }
 0x194   : > { %2773 = vtanh.f32 %v1603_v43  ;;  %v1571_v20 = vadd.f32 %v1507_v40, %v1251_v32  ;;  %v1441_v21 = vmul.f32 %v1377_v47, %v3760_v12  ;;  %v3781_v22 = vadd.f32 %v3464_v62, %v1149_v25 }
 0x195   : > { %v3783_v34 = vmul.f32 0.5, %v1217_v51  ;;  %v1473_v33 = vmul.f32 %v1409_v6, %v1217_v51  ;;  %v1414_v9 = vmul.f32 %v1350_v41, %v3763_v1  ;;  %v1446_v15 = vmul.f32 %v1382_v19, %v3766_v17 }
 0x196   : > { %v1635_v56 = vmul.f32 0.7978846, %v1571_v20  ;;  %v1505_v50 = vmul.f32 %v1441_v21, %v3760_v12  ;;  %v1348_v24 = vmul.f32 0.044715, %v3781_v22  ;;  %v3790_v32 = vadd.f32 %v3464_v62, %v1181_v3 }
 0x197   : > { %v2764_v38 = vpop.eup %2763  ;;  %v1537_v16 = vadd.f32 %v1473_v33, %v1217_v51  ;;  %v1478_v10 = vmul.f32 %v1414_v9, %v3763_v1  ;;  %v1510_v25 = vmul.f32 %v1446_v15, %v3766_v17 }
 0x198   : > { %v2766_v60 = vpop.eup %2765  ;;  %v1757_v2 = vadd.f32 1.0, %v2764_v38  ;;  %2775 = vtanh.f32 %v1635_v56  ;;  %v1569_v47 = vadd.f32 %v1505_v50, %v3760_v12  ;;  %v1412_v6 = vmul.f32 %v1348_v24, %v3781_v22 }
 0x199   : > { %v2768_v43 = vpop.eup %2767  ;;  %v1730_v40 = vadd.f32 1.0, %v2766_v60  ;;  %v1601_v20 = vmul.f32 0.7978846, %v1537_v16  ;;  %v1542_v3 = vadd.f32 %v1478_v10, %v3763_v1  ;;  %v1574_v9 = vadd.f32 %v1510_v25, %v3766_v17 }
 0x19a   : > { %v1821_v41 = vmul.f32 %v1757_v2, %v3722_v5  ;;  %v1762_v19 = vadd.f32 1.0, %v2768_v43  ;;  %v2770_v21 = vpop.eup %2769  ;;  %v1633_v33 = vmul.f32 0.7978846, %v1569_v47  ;;  %v1476_v15 = vmul.f32 %v1412_v6, %v3781_v22  ;;  %v1152_v43 = vld [vmem:[#allocation2 + $0x78] sm:$0xff] }
 0x19b   : > { %v1794_v51 = vmul.f32 %v1730_v40, %v3733_v54  ;;  %v2772_v38 = vpop.eup %2771  ;;  %v1728_v24 = vadd.f32 1.0, %v2770_v21  ;;  %2777 = vtanh.f32 %v1601_v20  ;;  %v1606_v2 = vmul.f32 0.7978846, %v1542_v3  ;;  %v1184_v40 = vld [vmem:[#allocation2 + $0x178] sm:$0xff]  ;;  %v1182_v20 = vld [vmem:[#allocation2 + $0x168] sm:$0xff] }
 0x19c   : > { %v2482_v56 = vpack.c.bf16 %v1821_v41, %v1821_v41  ;;  %v1826_v50 = vmul.f32 %v1762_v19, %v3751_v42  ;;  %v1760_v60 = vadd.f32 1.0, %v2772_v38  ;;  %2779 = vtanh.f32 %v1633_v33  ;;  %v1150_v19 = vld [vmem:[#allocation2 + $0x68] sm:$0xff] }
 0x19d   : > { %v2455_v5 = vpack.c.bf16 %v1794_v51, %v1794_v51  ;;  %v1792_v16 = vmul.f32 %v1728_v24, %v1280_v61  ;;  %v1638_v10 = vmul.f32 0.7978846, %v1574_v9  ;;  %v1540_v25 = vadd.f32 %v1476_v15, %v3781_v22 }
 0x19e   : > { %2142 = vst.msk [vmem:[%s3580_s21 + $0x94] sm:$0xf] %vm2104_vm2, %v2482_v56  ;;  %v2487_v54 = vpack.c.bf16 %v1826_v50, %v1826_v50  ;;  %v2774_v47 = vpop.eup %2773  ;;  %v1824_v42 = vmul.f32 %v1760_v60, %v3770_v11  ;;  %v1313_v6 = vmul.f32 0.5, %v3760_v12  ;;  %2781 = vtanh.f32 %v1606_v2 }
 0x19f   : > { %2115 = vst.msk [vmem:[%s3580_s21 + $0x28] sm:$0xf] %vm2104_vm2, %v2455_v5  ;;  %v1380_v41 = vmul.f32 0.044715, %v3790_v32  ;;  %v2453_v61 = vpack.c.bf16 %v1792_v16, %v1792_v16  ;;  %v1731_v3 = vadd.f32 1.0, %v2774_v47  ;;  %2783 = vtanh.f32 %v1638_v10 }
 0x1a0   : > { %2147 = vst.msk [vmem:[%s3580_s21 + $0xa8] sm:$0xf] %vm2104_vm2, %v2487_v54  ;;  %v1604_v21 = vmul.f32 0.7978846, %v1540_v25  ;;  %v2485_v51 = vpack.c.bf16 %v1824_v42, %v1824_v42  ;;  %v3814_v9 = vadd.f32 %v3464_v62, %v1152_v43  ;;  %v3817_v12 = vadd.f32 %v3464_v62, %v1184_v40  ;;  %v3847_v42 = vld [vmem:[#allocation8] ss:$0 sm:$0xff] }
 0x1a1   : > { %v1444_v33 = vmul.f32 %v1380_v41, %v3790_v32  ;;  %2113 = vst.msk [vmem:[%s3580_s21 + $0x20] sm:$0xf] %vm2104_vm2, %v2453_v61  ;;  %v1795_v11 = vmul.f32 %v1731_v3, %v3772_v28  ;;  %v3823_v15 = vadd.f32 %v3464_v62, %v1150_v19  ;;  %v3826_v38 = vadd.f32 %v3464_v62, %v1182_v20  ;;  %v1155_v28 = vld [vmem:[#allocation2 + $0x90] sm:$0xff] }
 0x1a2   : > { %2785 = vtanh.f32 %v1604_v21  ;;  %v2776_v56 = vpop.eup %2775  ;;  %2145 = vst.msk [vmem:[%s3580_s21 + $0xa0] sm:$0xf] %vm2104_vm2, %v2485_v51  ;;  %v1286_v50 = vmul.f32 0.5, %v3763_v1  ;;  %v1318_v24 = vmul.f32 0.5, %v3766_v17  ;;  %v1351_v60 = vmul.f32 0.044715, %v3814_v9 }
 0x1a3   : > { %v1508_v5 = vmul.f32 %v1444_v33, %v3790_v32  ;;  %v2456_v2 = vpack.c.bf16 %v1795_v11, %v1795_v11  ;;  %v1763_v54 = vadd.f32 1.0, %v2776_v56  ;;  %v1284_v16 = vmul.f32 0.5, %v3781_v22 }
 0x1a4   : > { %v1383_v62 = vmul.f32 0.044715, %v3817_v12  ;;  %v3837_v10 = vmul.f32 0.5, %v3790_v32  ;;  %v1415_v1 = vmul.f32 %v1351_v60, %v3814_v9  ;;  %v1349_v17 = vmul.f32 0.044715, %v3823_v15 }
 0x1a5   : > { %v1572_v25 = vadd.f32 %v1508_v5, %v3790_v32  ;;  %v2778_v43 = vpop.eup %2777  ;;  %2116 = vst.msk [vmem:[%s3580_s21 + $0x2c] sm:$0xf] %vm2104_vm2, %v2456_v2  ;;  %v1827_v40 = vmul.f32 %v1763_v54, %v3775_v27  ;;  %v1381_v22 = vmul.f32 0.044715, %v3826_v38  ;;  %v3850_v41 = vadd.f32 %v3847_v42, %v1155_v28 }
 0x1a6   : > { %v1447_v47 = vmul.f32 %v1383_v62, %v3817_v12  ;;  %v2780_v32 = vpop.eup %2779  ;;  %v1729_v19 = vadd.f32 1.0, %v2778_v43  ;;  %v1479_v61 = vmul.f32 %v1415_v1, %v3814_v9  ;;  %v1413_v3 = vmul.f32 %v1349_v17, %v3823_v15 }
 0x1a7   : > { %v1636_v20 = vmul.f32 0.7978846, %v1572_v25  ;;  %v2488_v21 = vpack.c.bf16 %v1827_v40, %v1827_v40  ;;  %v1761_v51 = vadd.f32 1.0, %v2780_v32  ;;  %v1445_v33 = vmul.f32 %v1381_v22, %v3826_v38 }
 0x1a8   : > { %v1511_v27 = vmul.f32 %v1447_v47, %v3817_v12  ;;  %v2782_v11 = vpop.eup %2781  ;;  %v1793_v56 = vmul.f32 %v1729_v19, %v3783_v34  ;;  %v1543_v5 = vadd.f32 %v1479_v61, %v3814_v9  ;;  %v1477_v60 = vmul.f32 %v1413_v3, %v3823_v15  ;;  %v1187_v3 = vld [vmem:[#allocation2 + $0x190] sm:$0xff] }
 0x1a9   : > { %2787 = vtanh.f32 %v1636_v20  ;;  %v2784_v28 = vpop.eup %2783  ;;  %2148 = vst.msk [vmem:[%s3580_s21 + $0xac] sm:$0xf] %vm2104_vm2, %v2488_v21  ;;  %v1825_v2 = vmul.f32 %v1761_v51, %v1313_v6  ;;  %v1734_v54 = vadd.f32 1.0, %v2782_v11  ;;  %v1509_v25 = vmul.f32 %v1445_v33, %v3826_v38  ;;  %v1153_v21 = vld [vmem:[#allocation2 + $0x80] sm:$0xff]  ;;  %v346_v11 = vld [vmem:[#allocation2 + $0x98] sm:$0xff] }
 0x1aa   : > { %v1575_v62 = vadd.f32 %v1511_v27, %v3817_v12  ;;  %v2454_v1 = vpack.c.bf16 %v1793_v56, %v1793_v56  ;;  %v1766_v17 = vadd.f32 1.0, %v2784_v28  ;;  %v1607_v43 = vmul.f32 0.7978846, %v1543_v5  ;;  %v1185_v51 = vld [vmem:[#allocation2 + $0x180] sm:$0xff]  ;;  %v378_v56 = vld [vmem:[#allocation2 + $0x198] sm:$0xff] }
 0x1ab   : > { %v1541_v34 = vadd.f32 %v1477_v60, %v3823_v15  ;;  %v2486_v47 = vpack.c.bf16 %v1825_v2, %v1825_v2  ;;  %v1798_v22 = vmul.f32 %v1734_v54, %v1286_v50  ;;  %v1573_v19 = vadd.f32 %v1509_v25, %v3826_v38  ;;  %v344_v54 = vld [vmem:[#allocation2 + $0x88] sm:$0xff] }
 0x1ac   : > { %v2786_v40 = vpop.eup %2785  ;;  %v1639_v32 = vmul.f32 0.7978846, %v1575_v62  ;;  %2114 = vst.msk [vmem:[%s3580_s21 + $0x24] sm:$0xf] %vm2104_vm2, %v2454_v1  ;;  %v1830_v6 = vmul.f32 %v1766_v17, %v1318_v24  ;;  %2789 = vtanh.f32 %v1607_v43  ;;  %v3870_v33 = vmul.f32 0.5, %v3814_v9  ;;  %v376_v17 = vld [vmem:[#allocation2 + $0x188] sm:$0xff] }
 0x1ad   : > { %v1732_v20 = vadd.f32 1.0, %v2786_v40  ;;  %v1605_v61 = vmul.f32 0.7978846, %v1541_v34  ;;  %2146 = vst.msk [vmem:[%s3580_s21 + $0xa4] sm:$0xf] %vm2104_vm2, %v2486_v47  ;;  %v2459_v27 = vpack.c.bf16 %v1798_v22, %v1798_v22  ;;  %v3876_v28 = vadd.f32 %v3847_v42, %v1187_v3  ;;  %v349_v43 = vld [vmem:[#allocation2 + $0xb0] sm:$0xff] }
 0x1ae   : > { %2791 = vtanh.f32 %v1639_v32  ;;  %v1637_v50 = vmul.f32 0.7978846, %v1573_v19  ;;  %v2491_v5 = vpack.c.bf16 %v1830_v6, %v1830_v6  ;;  %v1354_v60 = vmul.f32 0.044715, %v3850_v41  ;;  %v381_v34 = vld [vmem:[#allocation2 + $0x1b0] sm:$0xff] }
 0x1af   : > { %v1796_v24 = vmul.f32 %v1732_v20, %v1284_v16  ;;  %2793 = vtanh.f32 %v1605_v61  ;;  %2119 = vst.msk [vmem:[%s3580_s21 + $0x38] sm:$0xf] %vm2104_vm2, %v2459_v27  ;;  %v3879_v2 = vadd.f32 %v3847_v42, %v1153_v21  ;;  %v3882_v9 = vadd.f32 %v3847_v42, %v1185_v51  ;;  %v350_v51 = vld [vmem:[#allocation2 + $0xb8] sm:$0xff] }
 0x1b0   : > { %2795 = vtanh.f32 %v1637_v50  ;;  %2151 = vst.msk [vmem:[%s3580_s21 + $0xb8] sm:$0xf] %vm2104_vm2, %v2491_v5  ;;  %v1418_v62 = vmul.f32 %v1354_v60, %v3850_v41  ;;  %v1025_v25 = vadd.f32 %v3560_v29, %v346_v11  ;;  %v1057_v1 = vadd.f32 %v3566_v44, %v378_v56  ;;  %v382_v60 = vld [vmem:[#allocation2 + $0x1b8] sm:$0xff] }
 0x1b1   : > { %v2457_v16 = vpack.c.bf16 %v1796_v24, %v1796_v24  ;;  %v1319_v40 = vmul.f32 0.5, %v3817_v12  ;;  %v3891_v47 = vmul.f32 0.5, %v3823_v15  ;;  %v1386_v22 = vmul.f32 0.044715, %v3876_v28  ;;  %v347_v15 = vld [vmem:[#allocation2 + $0xa0] sm:$0xff] }
 0x1b2   : > { %v1352_v32 = vmul.f32 0.044715, %v3879_v2  ;;  %v3898_v6 = vmul.f32 0.5, %v3826_v38  ;;  %v1482_v29 = vmul.f32 %v1418_v62, %v3850_v41  ;;  %v1384_v44 = vmul.f32 0.044715, %v3882_v9  ;;  %1089 = vst.msk [vmem:[#allocation2 + $0x98] sm:$0xff] %vm262_vm0, %v1025_v25 }
 0x1b3   : > { %v2788_v19 = vpop.eup %2787  ;;  %2117 = vst.msk [vmem:[%s3580_s21 + $0x30] sm:$0xf] %vm2104_vm2, %v2457_v16  ;;  %v1023_v12 = vadd.f32 %v3568_v46, %v344_v54  ;;  %v1450_v61 = vmul.f32 %v1386_v22, %v3876_v28  ;;  %v1055_v21 = vadd.f32 %v3571_v63, %v376_v17  ;;  %v379_v38 = vld [vmem:[#allocation2 + $0x1a0] sm:$0xff]  ;;  %v1028_v11 = vadd.f32 %v3586_v31, %v349_v43 }
 0x1b4   : > { %1121 = vst.msk [vmem:[#allocation2 + $0x198] sm:$0xff] %vm262_vm0, %v1057_v1  ;;  %v1764_v20 = vadd.f32 1.0, %v2788_v19  ;;  %v1416_v3 = vmul.f32 %v1352_v32, %v3879_v2  ;;  %v1546_v27 = vadd.f32 %v1482_v29, %v3850_v41  ;;  %v1448_v50 = vmul.f32 %v1384_v44, %v3882_v9 }
 0x1b5   : > { %1087 = vst.msk [vmem:[#allocation2 + $0x88] sm:$0xff] %vm262_vm0, %v1023_v12  ;;  %v1060_v46 = vadd.f32 %v3590_v53, %v381_v34  ;;  %v1514_v5 = vmul.f32 %v1450_v61, %v3876_v28  ;;  %1119 = vst.msk [vmem:[#allocation2 + $0x188] sm:$0xff] %vm262_vm0, %v1055_v21  ;;  %v1026_v63 = vadd.f32 %v3592_v23, %v347_v15 }
 0x1b6   : > { %v1828_v56 = vmul.f32 %v1764_v20, %v3837_v10  ;;  %v1480_v24 = vmul.f32 %v1416_v3, %v3879_v2  ;;  %v2790_v54 = vpop.eup %2789  ;;  %v1610_v16 = vmul.f32 0.7978846, %v1546_v27  ;;  %v1512_v62 = vmul.f32 %v1448_v50, %v3882_v9  ;;  %1092 = vst.msk [vmem:[#allocation2 + $0xb0] sm:$0xff] %vm262_vm0, %v1028_v11 }
 0x1b7   : > { %1124 = vst.msk [vmem:[#allocation2 + $0x1b0] sm:$0xff] %vm262_vm0, %v1060_v46  ;;  %v1058_v31 = vadd.f32 %v3599_v7, %v379_v38  ;;  %v1029_v53 = vadd.f32 %v3601_v8, %v350_v51  ;;  %v1735_v1 = vadd.f32 1.0, %v2790_v54  ;;  %v1578_v17 = vadd.f32 %v1514_v5, %v3876_v28  ;;  %1090 = vst.msk [vmem:[#allocation2 + $0xa0] sm:$0xff] %vm262_vm0, %v1026_v63 }
 0x1b8   : > { %v2792_v10 = vpop.eup %2791  ;;  %v2489_v25 = vpack.c.bf16 %v1828_v56, %v1828_v56  ;;  %v1544_v23 = vadd.f32 %v1480_v24, %v3879_v2  ;;  %2797 = vtanh.f32 %v1610_v16  ;;  %v1576_v22 = vadd.f32 %v1512_v62, %v3882_v9 }
 0x1b9   : > { %v2794_v43 = vpop.eup %2793  ;;  %v1767_v34 = vadd.f32 1.0, %v2792_v10  ;;  %1122 = vst.msk [vmem:[#allocation2 + $0x1a0] sm:$0xff] %vm262_vm0, %v1058_v31  ;;  %1093 = vst.msk [vmem:[#allocation2 + $0xb8] sm:$0xff] %vm262_vm0, %v1029_v53  ;;  %v1061_v7 = vadd.f32 %v3610_v14, %v382_v60  ;;  %v1799_v32 = vmul.f32 %v1735_v1, %v3870_v33  ;;  %v1642_v29 = vmul.f32 0.7978846, %v1578_v17  ;;  %v1156_v12 = vld [vmem:[#allocation2 + $0x98] sm:$0xff] }
 0x1ba   : > { %v2796_v8 = vpop.eup %2795  ;;  %2149 = vst.msk [vmem:[%s3580_s21 + $0xb0] sm:$0xf] %vm2104_vm2, %v2489_v25  ;;  %v1733_v19 = vadd.f32 1.0, %v2794_v43  ;;  %v1608_v44 = vmul.f32 0.7978846, %v1544_v23  ;;  %v1227_v3 = vadd.f32 %v3847_v42, %v1156_v12  ;;  %v1322_v56 = vmul.f32 0.5, %v3876_v28 }
 0x1bb   : > { %v1831_v15 = vmul.f32 %v1767_v34, %v1319_v40  ;;  %v1765_v20 = vadd.f32 1.0, %v2796_v8  ;;  %v1640_v61 = vmul.f32 0.7978846, %v1576_v22  ;;  %v1188_v21 = vld [vmem:[#allocation2 + $0x198] sm:$0xff]  ;;  %1125 = vst.msk [vmem:[#allocation2 + $0x1b8] sm:$0xff] %vm262_vm0, %v1061_v7  ;;  %v2460_v38 = vpack.c.bf16 %v1799_v32, %v1799_v32 }
 0x1bc   : > { %v1797_v14 = vmul.f32 %v1733_v19, %v3891_v47  ;;  %2799 = vtanh.f32 %v1642_v29  ;;  %v1259_v33 = vadd.f32 %v3847_v42, %v1188_v21  ;;  %v1154_v51 = vld [vmem:[#allocation2 + $0x88] sm:$0xff]  ;;  %v1290_v40 = vmul.f32 0.5, %v3850_v41 }
 0x1bd   : > { %v2492_v27 = vpack.c.bf16 %v1831_v15, %v1831_v15  ;;  %v1829_v50 = vmul.f32 %v1765_v20, %v3898_v6  ;;  %2801 = vtanh.f32 %v1608_v44  ;;  %v1186_v11 = vld [vmem:[#allocation2 + $0x188] sm:$0xff]  ;;  %2120 = vst.msk [vmem:[%s3580_s21 + $0x3c] sm:$0xf] %vm2104_vm2, %v2460_v38  ;;  %v1355_v47 = vmul.f32 0.044715, %v1227_v3  ;;  %v1159_v5 = vld [vmem:[#allocation2 + $0xb0] sm:$0xff] }
 0x1be   : > { %v2458_v46 = vpack.c.bf16 %v1797_v14, %v1797_v14  ;;  %2803 = vtanh.f32 %v1640_v61  ;;  %v1191_v24 = vld [vmem:[#allocation2 + $0x1b0] sm:$0xff]  ;;  %v1387_v60 = vmul.f32 0.044715, %v1259_v33  ;;  %v1225_v6 = vadd.f32 %v3847_v42, %v1154_v51  ;;  %v1157_v31 = vld [vmem:[#allocation2 + $0xa0] sm:$0xff] }
 0x1bf   : > { %2152 = vst.msk [vmem:[%s3580_s21 + $0xbc] sm:$0xf] %vm2104_vm2, %v2492_v27  ;;  %v2490_v63 = vpack.c.bf16 %v1829_v50, %v1829_v50  ;;  %v3946_v41 = vadd.f32 %v3847_v42, %v1186_v11  ;;  %v1288_v54 = vmul.f32 0.5, %v3879_v2  ;;  %v1419_v16 = vmul.f32 %v1355_v47, %v1227_v3 }
 0x1c0   : > { %2118 = vst.msk [vmem:[%s3580_s21 + $0x34] sm:$0xf] %vm2104_vm2, %v2458_v46  ;;  %v3952_v28 = vadd.f32 %v3847_v42, %v1159_v5  ;;  %v3955_v62 = vadd.f32 %v3847_v42, %v1191_v24  ;;  %v1320_v53 = vmul.f32 0.5, %v3882_v9  ;;  %v3960_v10 = vmul.f32 0.5, %v1227_v3 }
 0x1c1   : > { %2150 = vst.msk [vmem:[%s3580_s21 + $0xb4] sm:$0xf] %vm2104_vm2, %v2490_v63  ;;  %v1451_v25 = vmul.f32 %v1387_v60, %v1259_v33  ;;  %v1353_v1 = vmul.f32 0.044715, %v1225_v6  ;;  %v1483_v17 = vmul.f32 %v1419_v16, %v1227_v3  ;;  %v3962_v23 = vmul.f32 0.5, %v1259_v33 }
 0x1c2   : > { %v1385_v2 = vmul.f32 0.044715, %v3946_v41  ;;  %v1358_v43 = vmul.f32 0.044715, %v3952_v28  ;;  %v2798_v34 = vpop.eup %2797  ;;  %v1390_v8 = vmul.f32 0.044715, %v3955_v62  ;;  %v3968_v32 = vadd.f32 %v3847_v42, %v1157_v31 }
 0x1c3   : > { %v1515_v22 = vmul.f32 %v1451_v25, %v1259_v33  ;;  %v1417_v7 = vmul.f32 %v1353_v1, %v1225_v6  ;;  %v1738_v9 = vadd.f32 1.0, %v2798_v34  ;;  %v1547_v19 = vadd.f32 %v1483_v17, %v1227_v3  ;;  %v1189_v17 = vld [vmem:[#allocation2 + $0x1a0] sm:$0xff] }
 0x1c4   : > { %v1449_v29 = vmul.f32 %v1385_v2, %v3946_v41  ;;  %v1422_v44 = vmul.f32 %v1358_v43, %v3952_v28  ;;  %v3972_v15 = vmul.f32 0.5, %v1225_v6  ;;  %v1454_v61 = vmul.f32 %v1390_v8, %v3955_v62  ;;  %v1160_v2 = vld [vmem:[#allocation2 + $0xb8] sm:$0xff]  ;;  %v380_v8 = vld [vmem:[#allocation2 + $0x1a8] sm:$0xff] }
 0x1c5   : > { %v1579_v12 = vadd.f32 %v1515_v22, %v1259_v33  ;;  %v1481_v20 = vmul.f32 %v1417_v7, %v1225_v6  ;;  %v1802_v38 = vmul.f32 %v1738_v9, %v1290_v40  ;;  %v1611_v14 = vmul.f32 0.7978846, %v1547_v19  ;;  %v1192_v22 = vld [vmem:[#allocation2 + $0x1b8] sm:$0xff]  ;;  %v348_v7 = vld [vmem:[#allocation2 + $0xa8] sm:$0xff] }
 0x1c6   : > { %v2800_v21 = vpop.eup %2799  ;;  %v1513_v51 = vmul.f32 %v1449_v29, %v3946_v41  ;;  %v1486_v27 = vmul.f32 %v1422_v44, %v3952_v28  ;;  %v1518_v47 = vmul.f32 %v1454_v61, %v3955_v62  ;;  %v1027_v61 = vadd.f32 %v3612_v30, %v348_v7 }
 0x1c7   : > { %v2802_v50 = vpop.eup %2801  ;;  %v1770_v3 = vadd.f32 1.0, %v2800_v21  ;;  %v1643_v11 = vmul.f32 0.7978846, %v1579_v12  ;;  %v1545_v46 = vadd.f32 %v1481_v20, %v1225_v6  ;;  %v2463_v5 = vpack.c.bf16 %v1802_v38, %v1802_v38  ;;  %v353_v38 = vld [vmem:[#allocation2 + $0xd0] sm:$0xff] }
 0x1c8   : > { %v2804_v33 = vpop.eup %2803  ;;  %v1736_v24 = vadd.f32 1.0, %v2802_v50  ;;  %2805 = vtanh.f32 %v1611_v14  ;;  %v1577_v63 = vadd.f32 %v1513_v51, %v3946_v41  ;;  %v1550_v1 = vadd.f32 %v1486_v27, %v3952_v28  ;;  %v385_v14 = vld [vmem:[#allocation2 + $0x1d0] sm:$0xff]  ;;  %1091 = vst.msk [vmem:[#allocation2 + $0xa8] sm:$0xff] %vm262_vm0, %v1027_v61 }
 0x1c9   : > { %v1834_v60 = vmul.f32 %v1770_v3, %v1322_v56  ;;  %v1768_v40 = vadd.f32 1.0, %v2804_v33  ;;  %2807 = vtanh.f32 %v1643_v11  ;;  %v1609_v16 = vmul.f32 0.7978846, %v1545_v46  ;;  %2123 = vst.msk [vmem:[%s3580_s21 + $0x48] sm:$0xf] %vm2104_vm2, %v2463_v5  ;;  %v351_v3 = vld [vmem:[#allocation2 + $0xc0] sm:$0xff] }
 0x1ca   : > { %v1800_v31 = vmul.f32 %v1736_v24, %v1288_v54  ;;  %v1641_v25 = vmul.f32 0.7978846, %v1577_v63  ;;  %v1582_v6 = vadd.f32 %v1518_v47, %v3955_v62  ;;  %v1356_v56 = vmul.f32 0.044715, %v3968_v32  ;;  %v383_v11 = vld [vmem:[#allocation2 + $0x1c0] sm:$0xff]  ;;  %v354_v46 = vld [vmem:[#allocation2 + $0xd8] sm:$0xff] }
 0x1cb   : > { %v2495_v43 = vpack.c.bf16 %v1834_v60, %v1834_v60  ;;  %v1832_v34 = vmul.f32 %v1768_v40, %v1320_v53  ;;  %2809 = vtanh.f32 %v1609_v16  ;;  %v1614_v54 = vmul.f32 0.7978846, %v1550_v1  ;;  %v386_v63 = vld [vmem:[#allocation2 + $0x1d8] sm:$0xff] }
 0x1cc   : > { %v2461_v9 = vpack.c.bf16 %v1800_v31, %v1800_v31  ;;  %2811 = vtanh.f32 %v1641_v25  ;;  %v1646_v19 = vmul.f32 0.7978846, %v1582_v6  ;;  %v1420_v44 = vmul.f32 %v1356_v56, %v3968_v32  ;;  %v352_v25 = vld [vmem:[#allocation2 + $0xc8] sm:$0xff] }
 0x1cd   : > { %2155 = vst.msk [vmem:[%s3580_s21 + $0xc8] sm:$0xf] %vm2104_vm2, %v2495_v43  ;;  %v2493_v29 = vpack.c.bf16 %v1832_v34, %v1832_v34  ;;  %v3988_v12 = vadd.f32 %v3847_v42, %v1189_v17  ;;  %v3991_v53 = vadd.f32 %v3847_v42, %v1160_v2  ;;  %2813 = vtanh.f32 %v1614_v54 }
 0x1ce   : > { %2121 = vst.msk [vmem:[%s3580_s21 + $0x40] sm:$0xf] %vm2104_vm2, %v2461_v9  ;;  %v3996_v20 = vadd.f32 %v3847_v42, %v1192_v22  ;;  %v1059_v21 = vadd.f32 %v3617_v35, %v380_v8  ;;  %v4003_v51 = vmul.f32 0.5, %v3946_v41  ;;  %2815 = vtanh.f32 %v1646_v19 }
 0x1cf   : > { %2153 = vst.msk [vmem:[%s3580_s21 + $0xc0] sm:$0xf] %vm2104_vm2, %v2493_v29  ;;  %v1484_v27 = vmul.f32 %v1420_v44, %v3968_v32  ;;  %v1388_v50 = vmul.f32 0.044715, %v3988_v12  ;;  %v4008_v47 = vmul.f32 0.5, %v3952_v28  ;;  %v4011_v30 = vmul.f32 0.5, %v3955_v62 }
 0x1d0   : > { %v1359_v35 = vmul.f32 0.044715, %v3991_v53  ;;  %v1391_v33 = vmul.f32 0.044715, %v3996_v20  ;;  %1123 = vst.msk [vmem:[#allocation2 + $0x1a8] sm:$0xff] %vm262_vm0, %v1059_v21  ;;  %v1032_v24 = vadd.f32 %v3638_v36, %v353_v38  ;;  %v1064_v28 = vadd.f32 %v3645_v45, %v385_v14  ;;  %v1158_v61 = vld [vmem:[#allocation2 + $0xa8] sm:$0xff] }
 0x1d1   : > { %v1548_v41 = vadd.f32 %v1484_v27, %v3968_v32  ;;  %v1452_v5 = vmul.f32 %v1388_v50, %v3988_v12  ;;  %v1030_v16 = vadd.f32 %v3647_v55, %v351_v3  ;;  %v1062_v31 = vadd.f32 %v3656_v52, %v383_v11  ;;  %v384_v52 = vld [vmem:[#allocation2 + $0x1c8] sm:$0xff] }
 0x1d2   : > { %v2806_v60 = vpop.eup %2805  ;;  %v1423_v62 = vmul.f32 %v1359_v35, %v3991_v53  ;;  %v1455_v40 = vmul.f32 %v1391_v33, %v3996_v20  ;;  %1096 = vst.msk [vmem:[#allocation2 + $0xd0] sm:$0xff] %vm262_vm0, %v1032_v24  ;;  %1128 = vst.msk [vmem:[#allocation2 + $0x1d0] sm:$0xff] %vm262_vm0, %v1064_v28  ;;  %v1033_v36 = vadd.f32 %v3658_v39, %v354_v46 }
 0x1d3   : > { %v2808_v1 = vpop.eup %2807  ;;  %v1739_v6 = vadd.f32 1.0, %v2806_v60  ;;  %v1612_v17 = vmul.f32 0.7978846, %v1548_v41  ;;  %v1516_v2 = vmul.f32 %v1452_v5, %v3988_v12  ;;  %1094 = vst.msk [vmem:[#allocation2 + $0xc0] sm:$0xff] %vm262_vm0, %v1030_v16  ;;  %1126 = vst.msk [vmem:[#allocation2 + $0x1c0] sm:$0xff] %vm262_vm0, %v1062_v31  ;;  %v1065_v55 = vadd.f32 %v3663_v0, %v386_v63 }
 0x1d4   : > { %v1771_v45 = vadd.f32 1.0, %v2808_v1  ;;  %v1487_v43 = vmul.f32 %v1423_v62, %v3991_v53  ;;  %v1519_v34 = vmul.f32 %v1455_v40, %v3996_v20  ;;  %1097 = vst.msk [vmem:[#allocation2 + $0xd8] sm:$0xff] %vm262_vm0, %v1033_v36  ;;  %v1031_v39 = vadd.f32 %v3665_v26, %v352_v25 }
 0x1d5   : > { %v2810_v56 = vpop.eup %2809  ;;  %v1803_v22 = vmul.f32 %v1739_v6, %v3960_v10  ;;  %2817 = vtanh.f32 %v1612_v17  ;;  %v1580_v7 = vadd.f32 %v1516_v2, %v3988_v12  ;;  %1129 = vst.msk [vmem:[#allocation2 + $0x1d8] sm:$0xff] %vm262_vm0, %v1065_v55  ;;  %v1063_v26 = vadd.f32 %v3672_v18, %v384_v52 }
 0x1d6   : > { %v2812_v8 = vpop.eup %2811  ;;  %v1835_v9 = vmul.f32 %v1771_v45, %v3962_v23  ;;  %v1737_v54 = vadd.f32 1.0, %v2810_v56  ;;  %v1551_v19 = vadd.f32 %v1487_v43, %v3991_v53  ;;  %v1583_v0 = vadd.f32 %v1519_v34, %v3996_v20  ;;  %1095 = vst.msk [vmem:[#allocation2 + $0xc8] sm:$0xff] %vm262_vm0, %v1031_v39 }
 0x1d7   : > { %v2464_v29 = vpack.c.bf16 %v1803_v22, %v1803_v22  ;;  %v1769_v10 = vadd.f32 1.0, %v2812_v8  ;;  %v1644_v44 = vmul.f32 0.7978846, %v1580_v7  ;;  %v1190_v21 = vld [vmem:[#allocation2 + $0x1a8] sm:$0xff]  ;;  %v2814_v38 = vpop.eup %2813  ;;  %v4049_v35 = vadd.f32 %v3847_v42, %v1158_v61  ;;  %1127 = vst.msk [vmem:[#allocation2 + $0x1c8] sm:$0xff] %vm262_vm0, %v1063_v26 }
 0x1d8   : > { %v2496_v23 = vpack.c.bf16 %v1835_v9, %v1835_v9  ;;  %v1801_v14 = vmul.f32 %v1737_v54, %v3972_v15  ;;  %v1615_v27 = vmul.f32 0.7978846, %v1551_v19  ;;  %v1647_v50 = vmul.f32 0.7978846, %v1583_v0  ;;  %v2816_v3 = vpop.eup %2815 }
 0x1d9   : > { %2124 = vst.msk [vmem:[%s3580_s21 + $0x4c] sm:$0xf] %vm2104_vm2, %v2464_v29  ;;  %v1833_v11 = vmul.f32 %v1769_v10, %v4003_v51  ;;  %v1742_v46 = vadd.f32 1.0, %v2814_v38  ;;  %2819 = vtanh.f32 %v1644_v44  ;;  %v1774_v15 = vadd.f32 1.0, %v2816_v3  ;;  %v1163_v41 = vld [vmem:[#allocation2 + $0xd0] sm:$0xff] }
 0x1da   : > { %2156 = vst.msk [vmem:[%s3580_s21 + $0xcc] sm:$0xf] %vm2104_vm2, %v2496_v23  ;;  %v2462_v18 = vpack.c.bf16 %v1801_v14, %v1801_v14  ;;  %2821 = vtanh.f32 %v1615_v27  ;;  %v4055_v33 = vadd.f32 %v3847_v42, %v1190_v21  ;;  %v1195_v5 = vld [vmem:[#allocation2 + $0x1d0] sm:$0xff]  ;;  %v1161_v28 = vld [vmem:[#allocation2 + $0xc0] sm:$0xff]  ;;  %v1357_v62 = vmul.f32 0.044715, %v4049_v35 }
 0x1db   : > { %v2494_v51 = vpack.c.bf16 %v1833_v11, %v1833_v11  ;;  %v1806_v24 = vmul.f32 %v1742_v46, %v4008_v47  ;;  %2823 = vtanh.f32 %v1647_v50  ;;  %v1193_v63 = vld [vmem:[#allocation2 + $0x1c0] sm:$0xff]  ;;  %v1838_v60 = vmul.f32 %v1774_v15, %v4011_v30  ;;  %v1164_v7 = vld [vmem:[#allocation2 + $0xd8] sm:$0xff] }
 0x1dc   : > { %2122 = vst.msk [vmem:[%s3580_s21 + $0x44] sm:$0xf] %vm2104_vm2, %v2462_v18  ;;  %v1389_v40 = vmul.f32 0.044715, %v4055_v33  ;;  %v4066_v31 = vadd.f32 %v3847_v42, %v1163_v41  ;;  %v4069_v47 = vadd.f32 %v3847_v42, %v1195_v5  ;;  %v4072_v25 = vadd.f32 %v3847_v42, %v1161_v28 }
 0x1dd   : > { %2154 = vst.msk [vmem:[%s3580_s21 + $0xc4] sm:$0xf] %vm2104_vm2, %v2494_v51  ;;  %v2467_v16 = vpack.c.bf16 %v1806_v24, %v1806_v24  ;;  %v2499_v1 = vpack.c.bf16 %v1838_v60, %v1838_v60  ;;  %v1421_v30 = vmul.f32 %v1357_v62, %v4049_v35  ;;  %v4077_v17 = vadd.f32 %v3847_v42, %v1193_v63  ;;  %v1196_v62 = vld [vmem:[#allocation2 + $0x1d8] sm:$0xff] }
 0x1de   : > { %v1453_v6 = vmul.f32 %v1389_v40, %v4055_v33  ;;  %v1292_v36 = vmul.f32 0.5, %v3968_v32  ;;  %v1324_v45 = vmul.f32 0.5, %v3988_v12  ;;  %v1362_v43 = vmul.f32 0.044715, %v4066_v31  ;;  %v1162_v40 = vld [vmem:[#allocation2 + $0xc8] sm:$0xff] }
 0x1df   : > { %v2818_v2 = vpop.eup %2817  ;;  %2127 = vst.msk [vmem:[%s3580_s21 + $0x58] sm:$0xf] %vm2104_vm2, %v2467_v16  ;;  %v1394_v34 = vmul.f32 0.044715, %v4069_v47  ;;  %2159 = vst.msk [vmem:[%s3580_s21 + $0xd8] sm:$0xf] %vm2104_vm2, %v2499_v1  ;;  %v1485_v56 = vmul.f32 %v1421_v30, %v4049_v35  ;;  %v4101_v44 = vadd.f32 %v3847_v42, %v1164_v7 }
 0x1e0   : > { %v1740_v55 = vadd.f32 1.0, %v2818_v2  ;;  %v1295_v52 = vmul.f32 0.5, %v3991_v53  ;;  %v1517_v22 = vmul.f32 %v1453_v6, %v4055_v33  ;;  %v1327_v39 = vmul.f32 0.5, %v3996_v20  ;;  %v1194_v16 = vld [vmem:[#allocation2 + $0x1c8] sm:$0xff]  ;;  %v357_v6 = vld [vmem:[#allocation2 + $0xf0] sm:$0xff] }
 0x1e1   : > { %v1426_v32 = vmul.f32 %v1362_v43, %v4066_v31  ;;  %v1458_v12 = vmul.f32 %v1394_v34, %v4069_v47  ;;  %v1360_v8 = vmul.f32 0.044715, %v4072_v25  ;;  %v1549_v54 = vadd.f32 %v1485_v56, %v4049_v35  ;;  %v389_v2 = vld [vmem:[#allocation2 + $0x1f0] sm:$0xff] }
 0x1e2   : > { %v1804_v9 = vmul.f32 %v1740_v55, %v1292_v36  ;;  %v1581_v19 = vadd.f32 %v1517_v22, %v4055_v33  ;;  %v1392_v53 = vmul.f32 0.044715, %v4077_v17  ;;  %v1363_v30 = vmul.f32 0.044715, %v4101_v44 }
 0x1e3   : > { %v2820_v0 = vpop.eup %2819  ;;  %v1490_v29 = vmul.f32 %v1426_v32, %v4066_v31  ;;  %v1522_v10 = vmul.f32 %v1458_v12, %v4069_v47  ;;  %v1424_v20 = vmul.f32 %v1360_v8, %v4072_v25  ;;  %v1613_v38 = vmul.f32 0.7978846, %v1549_v54  ;;  %v355_v32 = vld [vmem:[#allocation2 + $0xe0] sm:$0xff] }
 0x1e4   : > { %v2822_v61 = vpop.eup %2821  ;;  %v2465_v21 = vpack.c.bf16 %v1804_v9, %v1804_v9  ;;  %v1772_v26 = vadd.f32 1.0, %v2820_v0  ;;  %v1645_v23 = vmul.f32 0.7978846, %v1581_v19  ;;  %v1456_v15 = vmul.f32 %v1392_v53, %v4077_v17  ;;  %v387_v12 = vld [vmem:[#allocation2 + $0x1e0] sm:$0xff]  ;;  %v358_v53 = vld [vmem:[#allocation2 + $0xf8] sm:$0xff] }
 0x1e5   : > { %v2824_v14 = vpop.eup %2823  ;;  %v1743_v27 = vadd.f32 1.0, %v2822_v61  ;;  %v1554_v50 = vadd.f32 %v1490_v29, %v4066_v31  ;;  %v1586_v3 = vadd.f32 %v1522_v10, %v4069_v47  ;;  %v1488_v11 = vmul.f32 %v1424_v20, %v4072_v25  ;;  %v390_v0 = vld [vmem:[#allocation2 + $0x1f8] sm:$0xff] }
 0x1e6   : > { %2125 = vst.msk [vmem:[%s3580_s21 + $0x50] sm:$0xf] %vm2104_vm2, %v2465_v21  ;;  %v1836_v46 = vmul.f32 %v1772_v26, %v1324_v45  ;;  %v1775_v18 = vadd.f32 1.0, %v2824_v14  ;;  %2825 = vtanh.f32 %v1613_v38  ;;  %v1520_v60 = vmul.f32 %v1456_v15, %v4077_v17  ;;  %v388_v21 = vld [vmem:[#allocation2 + $0x1e8] sm:$0xff] }
 0x1e7   : > { %v1807_v41 = vmul.f32 %v1743_v27, %v1295_v52  ;;  %2827 = vtanh.f32 %v1645_v23  ;;  %v1618_v5 = vmul.f32 0.7978846, %v1554_v50  ;;  %v1650_v51 = vmul.f32 0.7978846, %v1586_v3 }
 0x1e8   : > { %v2497_v24 = vpack.c.bf16 %v1836_v46, %v1836_v46  ;;  %v1839_v28 = vmul.f32 %v1775_v18, %v1327_v39  ;;  %v1552_v63 = vadd.f32 %v1488_v11, %v4072_v25  ;;  %v1584_v43 = vadd.f32 %v1520_v60, %v4077_v17 }
 0x1e9   : > { %v2468_v1 = vpack.c.bf16 %v1807_v41, %v1807_v41  ;;  %2829 = vtanh.f32 %v1618_v5  ;;  %v1427_v34 = vmul.f32 %v1363_v30, %v4101_v44  ;;  %v4119_v55 = vadd.f32 %v3847_v42, %v1196_v62 }
 0x1ea   : > { %2157 = vst.msk [vmem:[%s3580_s21 + $0xd0] sm:$0xf] %vm2104_vm2, %v2497_v24  ;;  %v2500_v36 = vpack.c.bf16 %v1839_v28, %v1839_v28  ;;  %2831 = vtanh.f32 %v1650_v51  ;;  %v1616_v45 = vmul.f32 0.7978846, %v1552_v63  ;;  %v4122_v52 = vadd.f32 %v3847_v42, %v1162_v40 }
 0x1eb   : > { %2128 = vst.msk [vmem:[%s3580_s21 + $0x5c] sm:$0xf] %vm2104_vm2, %v2468_v1  ;;  %v4125_v56 = vadd.f32 %v3847_v42, %v1194_v16  ;;  %v1648_v22 = vmul.f32 0.7978846, %v1584_v43  ;;  %v1036_v7 = vadd.f32 %v3699_v58, %v357_v6  ;;  %v1068_v39 = vadd.f32 %v3715_v57, %v389_v2  ;;  %v356_v57 = vld [vmem:[#allocation2 + $0xe8] sm:$0xff] }
 0x1ec   : > { %2160 = vst.msk [vmem:[%s3580_s21 + $0xdc] sm:$0xf] %vm2104_vm2, %v2500_v36  ;;  %2833 = vtanh.f32 %v1616_v45  ;;  %v1293_v8 = vmul.f32 0.5, %v4049_v35  ;;  %v1325_v9 = vmul.f32 0.5, %v4055_v33  ;;  %v1491_v54 = vmul.f32 %v1427_v34, %v4101_v44 }
 0x1ed   : > { %v1395_v19 = vmul.f32 0.044715, %v4119_v55  ;;  %v1298_v29 = vmul.f32 0.5, %v4066_v31  ;;  %2835 = vtanh.f32 %v1648_v22  ;;  %v1361_v10 = vmul.f32 0.044715, %v4122_v52  ;;  %1100 = vst.msk [vmem:[#allocation2 + $0xf0] sm:$0xff] %vm262_vm0, %v1036_v7 }
 0x1ee   : > { %v1393_v58 = vmul.f32 0.044715, %v4125_v56  ;;  %1132 = vst.msk [vmem:[#allocation2 + $0x1f0] sm:$0xff] %vm262_vm0, %v1068_v39  ;;  %v1555_v35 = vadd.f32 %v1491_v54, %v4101_v44  ;;  %v1034_v20 = vadd.f32 %v3717_v4, %v355_v32  ;;  %v1066_v61 = vadd.f32 %v3725_v48, %v387_v12 }
 0x1ef   : > { %v1459_v33 = vmul.f32 %v1395_v19, %v4119_v55  ;;  %v1425_v26 = vmul.f32 %v1361_v10, %v4122_v52  ;;  %v1037_v23 = vadd.f32 %v3727_v59, %v358_v53  ;;  %v1069_v14 = vadd.f32 %v3731_v49, %v390_v0 }
 0x1f0   : > { %v2826_v31 = vpop.eup %2825  ;;  %v1457_v38 = vmul.f32 %v1393_v58, %v4125_v56  ;;  %v1619_v3 = vmul.f32 0.7978846, %v1555_v35  ;;  %1098 = vst.msk [vmem:[#allocation2 + $0xe0] sm:$0xff] %vm262_vm0, %v1034_v20  ;;  %1130 = vst.msk [vmem:[#allocation2 + $0x1e0] sm:$0xff] %vm262_vm0, %v1066_v61  ;;  %v1035_v4 = vadd.f32 %v3737_v13, %v356_v57  ;;  %v1067_v59 = vadd.f32 %v3743_v37, %v388_v21 }
 0x1f1   : > { %v2828_v27 = vpop.eup %2827  ;;  %v1741_v50 = vadd.f32 1.0, %v2826_v31  ;;  %v1523_v11 = vmul.f32 %v1459_v33, %v4119_v55  ;;  %v1489_v46 = vmul.f32 %v1425_v26, %v4122_v52  ;;  %1101 = vst.msk [vmem:[#allocation2 + $0xf8] sm:$0xff] %vm262_vm0, %v1037_v23  ;;  %1133 = vst.msk [vmem:[#allocation2 + $0x1f8] sm:$0xff] %vm262_vm0, %v1069_v14  ;;  %v1330_v41 = vmul.f32 0.5, %v4069_v47 }
 0x1f2   : > { %v1773_v48 = vadd.f32 1.0, %v2828_v27  ;;  %v1521_v18 = vmul.f32 %v1457_v38, %v4125_v56  ;;  %2837 = vtanh.f32 %v1619_v3  ;;  %1099 = vst.msk [vmem:[#allocation2 + $0xe8] sm:$0xff] %vm262_vm0, %v1035_v4  ;;  %1131 = vst.msk [vmem:[#allocation2 + $0x1e8] sm:$0xff] %vm262_vm0, %v1067_v59  ;;  %v1296_v47 = vmul.f32 0.5, %v4072_v25 }
 0x1f3   : > { %v2830_v49 = vpop.eup %2829  ;;  %v1805_v15 = vmul.f32 %v1741_v50, %v1293_v8  ;;  %v1587_v5 = vadd.f32 %v1523_v11, %v4119_v55  ;;  %v1553_v28 = vadd.f32 %v1489_v46, %v4122_v52  ;;  %v1328_v7 = vmul.f32 0.5, %v4077_v17 }
 0x1f4   : > { %v2832_v13 = vpop.eup %2831  ;;  %v1837_v51 = vmul.f32 %v1773_v48, %v1325_v9  ;;  %v1746_v24 = vadd.f32 1.0, %v2830_v49  ;;  %v1585_v63 = vadd.f32 %v1521_v18, %v4125_v56  ;;  %v1167_v40 = vld [vmem:[#allocation2 + $0xf0] sm:$0xff]  ;;  %v1299_v35 = vmul.f32 0.5, %v4101_v44 }
 0x1f5   : > { %v2466_v37 = vpack.c.bf16 %v1805_v15, %v1805_v15  ;;  %v1778_v60 = vadd.f32 1.0, %v2832_v13  ;;  %v1651_v62 = vmul.f32 0.7978846, %v1587_v5  ;;  %v1199_v16 = vld [vmem:[#allocation2 + $0x1f0] sm:$0xff]  ;;  %v1617_v2 = vmul.f32 0.7978846, %v1553_v28 }
 0x1f6   : > { %v2834_v1 = vpop.eup %2833  ;;  %v2498_v30 = vpack.c.bf16 %v1837_v51, %v1837_v51  ;;  %v1810_v6 = vmul.f32 %v1746_v24, %v1298_v29  ;;  %v1649_v36 = vmul.f32 0.7978846, %v1585_v63  ;;  %v4167_v34 = vadd.f32 %v3847_v42, %v1167_v40 }
 0x1f7   : > { %2126 = vst.msk [vmem:[%s3580_s21 + $0x54] sm:$0xf] %vm2104_vm2, %v2466_v37  ;;  %v1842_v45 = vmul.f32 %v1778_v60, %v1330_v41  ;;  %v1744_v43 = vadd.f32 1.0, %v2834_v1  ;;  %2839 = vtanh.f32 %v1651_v62  ;;  %v2836_v22 = vpop.eup %2835  ;;  %v4173_v39 = vadd.f32 %v3847_v42, %v1199_v16  ;;  %v1165_v32 = vld [vmem:[#allocation2 + $0xe0] sm:$0xff] }
 0x1f8   : > { %2158 = vst.msk [vmem:[%s3580_s21 + $0xd4] sm:$0xf] %vm2104_vm2, %v2498_v30  ;;  %v2471_v25 = vpack.c.bf16 %v1810_v6, %v1810_v6  ;;  %2841 = vtanh.f32 %v1617_v2  ;;  %v1197_v12 = vld [vmem:[#allocation2 + $0x1e0] sm:$0xff]  ;;  %v1776_v54 = vadd.f32 1.0, %v2836_v22  ;;  %v1168_v19 = vld [vmem:[#allocation2 + $0xf8] sm:$0xff]  ;;  %v4182_v58 = vadd.f32 %v3847_v42, %v1165_v32 }
 0x1f9   : > { %v2503_v8 = vpack.c.bf16 %v1842_v45, %v1842_v45  ;;  %v1808_v9 = vmul.f32 %v1744_v43, %v1296_v47  ;;  %2843 = vtanh.f32 %v1649_v36  ;;  %v1366_v53 = vmul.f32 0.044715, %v4167_v34  ;;  %v1200_v29 = vld [vmem:[#allocation2 + $0x1f8] sm:$0xff]  ;;  %v1166_v3 = vld [vmem:[#allocation2 + $0xe8] sm:$0xff] }
 0x1fa   : > { %2131 = vst.msk [vmem:[%s3580_s21 + $0x68] sm:$0xf] %vm2104_vm2, %v2471_v25  ;;  %v1398_v0 = vmul.f32 0.044715, %v4173_v39  ;;  %v1840_v10 = vmul.f32 %v1776_v54, %v1328_v7  ;;  %v4185_v57 = vadd.f32 %v3847_v42, %v1197_v12  ;;  %v4191_v61 = vadd.f32 %v3847_v42, %v1168_v19  ;;  %v1198_v25 = vld [vmem:[#allocation2 + $0x1e8] sm:$0xff] }
 0x1fb   : > { %2163 = vst.msk [vmem:[%s3580_s21 + $0xe8] sm:$0xf] %vm2104_vm2, %v2503_v8  ;;  %v2469_v17 = vpack.c.bf16 %v1808_v9, %v1808_v9  ;;  %v1430_v33 = vmul.f32 %v1366_v53, %v4167_v34  ;;  %v1331_v26 = vmul.f32 0.5, %v4119_v55  ;;  %v1364_v38 = vmul.f32 0.044715, %v4182_v58 }
 0x1fc   : > { %v1462_v20 = vmul.f32 %v1398_v0, %v4173_v39  ;;  %v2838_v21 = vpop.eup %2837  ;;  %v2501_v31 = vpack.c.bf16 %v1840_v10, %v1840_v10  ;;  %v4198_v23 = vadd.f32 %v3847_v42, %v1200_v29  ;;  %v1396_v50 = vmul.f32 0.044715, %v4185_v57  ;;  %v2862_v19 = vld [vmem:[#allocation8] ss:$0 sm:$0xff] }
 0x1fd   : > { %2129 = vst.msk [vmem:[%s3580_s21 + $0x60] sm:$0xf] %vm2104_vm2, %v2469_v17  ;;  %v1747_v14 = vadd.f32 1.0, %v2838_v21  ;;  %v1494_v44 = vmul.f32 %v1430_v33, %v4167_v34  ;;  %v1297_v11 = vmul.f32 0.5, %v4122_v52  ;;  %v1329_v4 = vmul.f32 0.5, %v4125_v56 }
 0x1fe   : > { %v1526_v27 = vmul.f32 %v1462_v20, %v4173_v39  ;;  %2161 = vst.msk [vmem:[%s3580_s21 + $0xe0] sm:$0xf] %vm2104_vm2, %v2501_v31  ;;  %v1428_v55 = vmul.f32 %v1364_v38, %v4182_v58  ;;  %v1367_v48 = vmul.f32 0.044715, %v4191_v61  ;;  %v1460_v49 = vmul.f32 %v1396_v50, %v4185_v57 }
 0x1ff   : > { %v1811_v46 = vmul.f32 %v1747_v14, %v1299_v35  ;;  %v1558_v18 = vadd.f32 %v1494_v44, %v4167_v34  ;;  %v1399_v52 = vmul.f32 0.044715, %v4198_v23  ;;  %v4216_v56 = vadd.f32 %v3847_v42, %v1166_v3 }
 0x200   : > { %v1590_v59 = vadd.f32 %v1526_v27, %v4173_v39  ;;  %v1492_v41 = vmul.f32 %v1428_v55, %v4182_v58  ;;  %v1431_v5 = vmul.f32 %v1367_v48, %v4191_v61  ;;  %v1524_v62 = vmul.f32 %v1460_v49, %v4185_v57 }
 0x201   : > { %v2840_v15 = vpop.eup %2839  ;;  %v2472_v51 = vpack.c.bf16 %v1811_v46, %v1811_v46  ;;  %v1622_v28 = vmul.f32 0.7978846, %v1558_v18  ;;  %v1463_v42 = vmul.f32 %v1399_v52, %v4198_v23  ;;  %v1365_v54 = vmul.f32 0.044715, %v4216_v56 }
 0x202   : > { %v2842_v13 = vpop.eup %2841  ;;  %v1779_v24 = vadd.f32 1.0, %v2840_v15  ;;  %v1654_v63 = vmul.f32 0.7978846, %v1590_v59  ;;  %v1556_v47 = vadd.f32 %v1492_v41, %v4182_v58  ;;  %v1495_v40 = vmul.f32 %v1431_v5, %v4191_v61 }
 0x203   : > { %v2844_v37 = vpop.eup %2843  ;;  %v1745_v60 = vadd.f32 1.0, %v2842_v13  ;;  %2132 = vst.msk [vmem:[%s3580_s21 + $0x6c] sm:$0xf] %vm2104_vm2, %v2472_v51  ;;  %2845 = vtanh.f32 %v1622_v28  ;;  %v1588_v2 = vadd.f32 %v1524_v62, %v4185_v57  ;;  %v1527_v22 = vmul.f32 %v1463_v42, %v4198_v23 }
 0x204   : > { %v1843_v16 = vmul.f32 %v1779_v24, %v1331_v26  ;;  %v1777_v1 = vadd.f32 1.0, %v2844_v37  ;;  %2847 = vtanh.f32 %v1654_v63  ;;  %v1620_v6 = vmul.f32 0.7978846, %v1556_v47 }
 0x205   : > { %v1809_v30 = vmul.f32 %v1745_v60, %v1297_v11  ;;  %v1559_v43 = vadd.f32 %v1495_v40, %v4191_v61  ;;  %v1652_v32 = vmul.f32 0.7978846, %v1588_v2  ;;  %v1591_v9 = vadd.f32 %v1527_v22, %v4198_v23 }
 0x206   : > { %v2504_v36 = vpack.c.bf16 %v1843_v16, %v1843_v16  ;;  %v1841_v45 = vmul.f32 %v1777_v1, %v1329_v4  ;;  %2849 = vtanh.f32 %v1620_v6  ;;  %v1269_v53 = vadd.f32 %v2862_v19, %v1198_v25 }
 0x207   : > { %v2470_v7 = vpack.c.bf16 %v1809_v30, %v1809_v30  ;;  %v1623_v8 = vmul.f32 0.7978846, %v1559_v43  ;;  %2851 = vtanh.f32 %v1652_v32  ;;  %v1655_v0 = vmul.f32 0.7978846, %v1591_v9 }
 0x208   : > { %2164 = vst.msk [vmem:[%s3580_s21 + $0xec] sm:$0xf] %vm2104_vm2, %v2504_v36  ;;  %v2502_v12 = vpack.c.bf16 %v1841_v45, %v1841_v45  ;;  %v1429_v29 = vmul.f32 %v1365_v54, %v4216_v56  ;;  %v1397_v17 = vmul.f32 0.044715, %v1269_v53  ;;  %v1302_v31 = vmul.f32 0.5, %v4167_v34 }
 0x209   : > { %2130 = vst.msk [vmem:[%s3580_s21 + $0x64] sm:$0xf] %vm2104_vm2, %v2470_v7  ;;  %2853 = vtanh.f32 %v1623_v8  ;;  %v1334_v14 = vmul.f32 0.5, %v4173_v39  ;;  %v1300_v55 = vmul.f32 0.5, %v4182_v58  ;;  %v1332_v39 = vmul.f32 0.5, %v4185_v57 }
 0x20a   : > { %2162 = vst.msk [vmem:[%s3580_s21 + $0xe4] sm:$0xf] %vm2104_vm2, %v2502_v12  ;;  %2855 = vtanh.f32 %v1655_v0  ;;  %v1493_v10 = vmul.f32 %v1429_v29, %v4216_v56  ;;  %v1461_v35 = vmul.f32 %v1397_v17, %v1269_v53  ;;  %v1303_v5 = vmul.f32 0.5, %v4191_v61 }
 0x20b   : > { %v1335_v28 = vmul.f32 0.5, %v4198_v23  ;;  %v1301_v23 = vmul.f32 0.5, %v4216_v56  ;;  %v1333_v1 = vmul.f32 0.5, %v1269_v53 }
 0x20c   : > { %v1557_v20 = vadd.f32 %v1493_v10, %v4216_v56  ;;  %v1525_v38 = vmul.f32 %v1461_v35, %v1269_v53 }
 0x20d   : > { %v2846_v33 = vpop.eup %2845 }
 0x20e   : > { %v2848_v21 = vpop.eup %2847  ;;  %v1750_v26 = vadd.f32 1.0, %v2846_v33  ;;  %v1621_v27 = vmul.f32 0.7978846, %v1557_v20  ;;  %v1589_v11 = vadd.f32 %v1525_v38, %v1269_v53 }
 0x20f   : > { %v1782_v44 = vadd.f32 1.0, %v2848_v21 }
 0x210   : > { %v2850_v50 = vpop.eup %2849  ;;  %v1814_v3 = vmul.f32 %v1750_v26, %v1302_v31  ;;  %2857 = vtanh.f32 %v1621_v27  ;;  %v1653_v59 = vmul.f32 0.7978846, %v1589_v11 }
 0x211   : > { %v1846_v4 = vmul.f32 %v1782_v44, %v1334_v14  ;;  %v1748_v48 = vadd.f32 1.0, %v2850_v50  ;;  %v2852_v46 = vpop.eup %2851 }
 0x212   : > { %v2475_v18 = vpack.c.bf16 %v1814_v3, %v1814_v3  ;;  %v1780_v41 = vadd.f32 1.0, %v2852_v46  ;;  %2859 = vtanh.f32 %v1653_v59 }
 0x213   : > { %v2854_v34 = vpop.eup %2853  ;;  %v2507_v49 = vpack.c.bf16 %v1846_v4, %v1846_v4  ;;  %v1812_v15 = vmul.f32 %v1748_v48, %v1300_v55 }
 0x214   : > { %2135 = vst.msk [vmem:[%s3580_s21 + $0x78] sm:$0xf] %vm2104_vm2, %v2475_v18  ;;  %v1751_v58 = vadd.f32 1.0, %v2854_v34  ;;  %v2856_v52 = vpop.eup %2855  ;;  %v1844_v51 = vmul.f32 %v1780_v41, %v1332_v39 }
 0x215   : > { %2167 = vst.msk [vmem:[%s3580_s21 + $0xf8] sm:$0xf] %vm2104_vm2, %v2507_v49  ;;  %v2473_v13 = vpack.c.bf16 %v1812_v15, %v1812_v15  ;;  %v1783_v63 = vadd.f32 1.0, %v2856_v52 }
 0x216   : > { %v1815_v24 = vmul.f32 %v1751_v58, %v1303_v5  ;;  %v2505_v57 = vpack.c.bf16 %v1844_v51, %v1844_v51 }
 0x217   : > { %2133 = vst.msk [vmem:[%s3580_s21 + $0x70] sm:$0xf] %vm2104_vm2, %v2473_v13  ;;  %v1847_v60 = vmul.f32 %v1783_v63, %v1335_v28 }
 0x218   : > { %v2476_v37 = vpack.c.bf16 %v1815_v24, %v1815_v24  ;;  %2165 = vst.msk [vmem:[%s3580_s21 + $0xf0] sm:$0xf] %vm2104_vm2, %v2505_v57 }
 0x219   : > { %v2508_v61 = vpack.c.bf16 %v1847_v60, %v1847_v60 }
 0x21a   : > { %2136 = vst.msk [vmem:[%s3580_s21 + $0x7c] sm:$0xf] %vm2104_vm2, %v2476_v37  ;;  %v2858_v47 = vpop.eup %2857 }
 0x21b   : > { %2168 = vst.msk [vmem:[%s3580_s21 + $0xfc] sm:$0xf] %vm2104_vm2, %v2508_v61  ;;  %v1749_v62 = vadd.f32 1.0, %v2858_v47 }
 0x21c   : > { %v2860_v40 = vpop.eup %2859 }
 0x21d   : > { %v1813_v16 = vmul.f32 %v1749_v62, %v1301_v23  ;;  %v1781_v42 = vadd.f32 1.0, %v2860_v40 }
 0x21f   : > { %v2474_v30 = vpack.c.bf16 %v1813_v16, %v1813_v16  ;;  %v1845_v6 = vmul.f32 %v1781_v42, %v1333_v1 }
 0x221   : > { %2134 = vst.msk [vmem:[%s3580_s21 + $0x74] sm:$0xf] %vm2104_vm2, %v2474_v30  ;;  %v2506_v56 = vpack.c.bf16 %v1845_v6, %v1845_v6 }
 0x223   : > { %2166 = vst.msk [vmem:[%s3580_s21 + $0xf4] sm:$0xf] %vm2104_vm2, %v2506_v56 }
 0x224   : > { %2962 = shalt.err (!%p2959_p9)
}
 0x225   : > { %s2963_s4 = scalar_lea.hbm %s4264_s11, 4096  ;;  %s2967_s6 = scalar_lea.hbm %s4320_s3, 8192 }
 0x226   : > { %p2964_p8 = scmp.ne.s32.totalorder %s4264_s11, %s2963_s4  ;;  %p2968_p7 = scmp.lt.u32.totalorder %s4264_s11, %s4320_s3 }
 0x227   : > { %p2969_p12 = scmp.lt.u32.totalorder %s2967_s6, %s2963_s4  ;;  %p2971_p5 = scmp.lt.u32.totalorder %s2963_s4, %s4264_s11 }
 0x228   : > { %p2965_p13 = pnand %p2964_p8, %p4339_p10 }
 0x229   : > { %p2970_p3 = por %p2969_p12, %p2968_p7 }
 0x22a   : > { %p2966_p4 = pneg %p2965_p13 }
 0x22b   : > { %p2972_p11 = por %p2971_p5, %p2970_p3 }
 0x22d   : > { %p2973_p1 = pnand %p2972_p11, %p2966_p4 }
 0x22f   : > { %2976 = shalt.err (!%p2973_p1)
}
 0x230   : > { %s3044_s21 = smov 64   ;;  %s3045_s23 = smov 4  }
 0x231   : > { %2623 = dma.vmem_to_hbm [thread:$0]  (%p4339_p10), %s4266_s26, 4096, %s4264_s11, %s2170_s18, %s3044_s21, %s3044_s21, %s3045_s23  }
 0x232 PF: > { %s2199_s29 = sand.u32 1, %s3015_s12   ;;  %p4340_p0 = scmp.ne.s32.totalorder %s4331_s25, 0 }
 0x233   : > { %p4341_p6 = scmp.ge.s32.totalorder %s3035_s17, 2  ;;  %s2200_s9 = scalar_lea.sflag [#allocation5], %s2199_s29 }
 0x235   : > { %p2637_p2 = pnand %p4341_p6, %p4340_p0 }
 0x237   : > { %3010 = dma.done.wait (!%p2637_p2), %s2200_s9, 4096  }
 0x238   : > { %3012 = vsyncadd (!%p2637_p2), %s2200_s9, 4294963200  ;;  %s20_s17 = sadd.s32 1, %s3035_s17   ;;  %s4342_s12 = smov %s3019_s13 }
 0x239   : > { %p17_p9 = scmp.ge.s32.totalorder %s20_s17, 4   ;;  %s4343_s13 = smov %s3023_s14 }
 0x23a   : > { %s4344_s14 = smov %s3215_s28  ;;  %s4345_s15 = smov %s3031_s16 }
 0x23b   : > { %s4346_s16 = smov %s4348_s27  ;;  %19 = sbr.rel (!%p17_p9) target bundleno = 7 (0x7), region = 95 }
 0x242   :  { %2205 = vsyncpa [#allocation4], 1 }
 0x243   :  { %2207 = vsyncpa [#allocation4 + $0x1], 1 }
 0x244   :  { %2208 = vsyncpa [#allocation7], 1 }
 0x245   :  { %2209 = vsyncpa [#allocation5], 1 }
 0x246   :  { %2211 = vsyncpa [#allocation5 + $0x1], 1 }

</bundles_post_ra>
